<compile_context>
chip_gen: v7x
topology: tpu7x:2x2x1
jax: 0.10.0
libtpu: 0.0.40
codegen_flags: <defaults>
</compile_context>

<pallas_src>
import functools
import math

import jax
import jax.numpy as jnp
from jax.experimental import pallas as pl
from jax.experimental.pallas import tpu as pltpu


def _round_up(x, m):
    return (x + m - 1) // m * m


def _encoder_kernel(x_ref, mask_ref,
                    wqkv_ref, bqkv_ref, wo_ref, bo_ref,
                    g1_ref, be1_ref,
                    w1_ref, b1_ref, w2_ref, b2_ref,
                    g2_ref, be2_ref,
                    out_ref,
                    attn_scratch,
                    *, nhead, head_dim, head_dim_p, d_real, eps):
    """One grid step = (batch_block, layer): a full post-norm encoder layer."""
    layer = pl.program_id(1)

    # Seed the resident activation block with the kernel input at layer 0.
    @pl.when(layer == 0)
    def _():
        out_ref[...] = x_ref[...]

    x = out_ref[...]                      # (Bb, T, D_p) f32, resident across layers
    Bb, T, Dp = x.shape
    Dh = nhead * head_dim_p               # padded concat-of-heads width

    x2 = x.reshape(Bb * T, Dp)
    xb = x2.astype(jnp.bfloat16)

    # ---- Q/K/V: three bf16 MXU matmuls; only bf16 q/k/v stay live ----
    def proj(lo):
        w = wqkv_ref[0, :, lo:lo + Dh]                     # (D_p, Dh) bf16, 128-aligned
        b = bqkv_ref[0, :, lo:lo + Dh]                     # (1, Dh) f32
        y = jnp.dot(xb, w, preferred_element_type=jnp.float32) + b
        return y.astype(jnp.bfloat16).reshape(Bb, T, Dh)

    q = proj(0)
    k = proj(Dh)
    v = proj(2 * Dh)

    # ---- attention: lane-group-aligned head slices (head_dim padded to 128) ----
    scale = 1.0 / math.sqrt(head_dim)                      # REAL head_dim
    mask_b = jnp.broadcast_to(mask_ref[...], (Bb, T, T))   # hoisted broadcast
    for h in range(nhead):
        lo, hi = h * head_dim_p, (h + 1) * head_dim_p      # 128-aligned lanes
        s = jnp.einsum('bqd,bkd->bqk', q[:, :, lo:hi], k[:, :, lo:hi],
                       preferred_element_type=jnp.float32) * scale
        s = s + mask_b
        s = s - jnp.max(s, axis=-1, keepdims=True)
        p = jnp.exp(s)
        p = p * pl.reciprocal(jnp.sum(p, axis=-1, keepdims=True), approx=True)
        o_h = jnp.einsum('bqk,bkd->bqd', p.astype(jnp.bfloat16), v[:, :, lo:hi],
                         preferred_element_type=jnp.float32)
        attn_scratch[:, :, lo:hi] = o_h.astype(jnp.bfloat16)   # unmasked lane-dense store

    attn = attn_scratch[...].reshape(Bb * T, Dh)           # bf16, no extra cast
    attn = jnp.dot(attn, wo_ref[0], preferred_element_type=jnp.float32) + bo_ref[0]

    # ---- add & layernorm 1 (post-norm, f32).  Stats over REAL feature count;
    #      padded lanes hold zeros and gamma/beta pads are zero, so pads stay 0.
    inv_d = 1.0 / d_real
    y = x2 + attn
    mu = jnp.sum(y, axis=-1, keepdims=True) * inv_d
    var = jnp.maximum(jnp.sum(y * y, axis=-1, keepdims=True) * inv_d - mu * mu, 0.0)
    y = (y - mu) * jax.lax.rsqrt(var + eps) * g1_ref[0] + be1_ref[0]

    # ---- feed-forward (relu), bf16 matmuls ----
    h1 = jnp.dot(y.astype(jnp.bfloat16), w1_ref[0],
                 preferred_element_type=jnp.float32) + b1_ref[0]
    h1 = jnp.maximum(h1, 0.0).astype(jnp.bfloat16)
    h2 = jnp.dot(h1, w2_ref[0], preferred_element_type=jnp.float32) + b2_ref[0]

    # ---- add & layernorm 2 ----
    z = y + h2
    mu = jnp.sum(z, axis=-1, keepdims=True) * inv_d
    var = jnp.maximum(jnp.sum(z * z, axis=-1, keepdims=True) * inv_d - mu * mu, 0.0)
    z = (z - mu) * jax.lax.rsqrt(var + eps) * g2_ref[0] + be2_ref[0]

    out_ref[...] = z.reshape(Bb, T, Dp).astype(out_ref.dtype)
    # TODO(synk): training-mode dropout is not implemented (inference semantics).


def _choose_block_b(B, T, D_p, Dh_p, FF_p, weight_bytes_per_layer,
                    vmem_budget, rows_target):
    """Largest divisor of B whose estimated VMEM footprint fits; prefer >=2
    batch blocks (megacore / v7x dual-TC sharding) when rows still fill the MXU."""
    f32, bf16 = 4, 2

    def usage(bb):
        r = bb * T
        u = bb * T * D_p * f32                      # resident activation (out block)
        u += 2 * bb * T * D_p * f32                 # double-buffered input block
        u += 2 * bb * T * f32                       # mask blocks
        u += 2 * weight_bytes_per_layer             # double-buffered layer weights
        u += bb * T * Dh_p * bf16                   # bf16 attention scratch
        u += 3 * r * Dh_p * bf16                    # q, k, v
        u += r * Dh_p * f32                         # one f32 projection temp
        u += 2 * bb * T * T * f32                   # scores + probs (one head live)
        u += r * FF_p * (f32 + bf16)                # FFN hidden
        u += 2 * r * D_p * f32                      # y / z temporaries
        return u

    divs = [d for d in range(1, B + 1) if B % d == 0]
    fitting = [d for d in divs if usage(d) <= vmem_budget] or [1]
    multi = [d for d in fitting if B // d >= 2 and d * T >= rows_target]
    if multi:
        return max(multi)
    return max(fitting)


def video_encoder_forward(vid_embeds, params, src_key_padding_mask=None, *,
                          nhead, block_b=None):
    """vid_embeds: (B, T, d_model) f32; src_key_padding_mask: (B, T) bool (True = pad)."""
    B, T, D = vid_embeds.shape
    L = params["wqkv"].shape[0]
    assert D % nhead == 0
    hd = D // nhead
    hd_p = _round_up(hd, 128)
    D_p = _round_up(D, 128)
    Dh_p = nhead * hd_p
    FF_p = params["w1"].shape[2]
    assert params["wqkv"].shape[1] == D_p and params["wqkv"].shape[2] == 3 * Dh_p

    # ---- generation-aware VMEM budget and MXU row-fill target ----
    kind = jax.devices()[0].device_kind.lower()
    try:
        vmem_cap = int(pltpu.get_tpu_info().vmem_capacity_bytes)
    except Exception:
        vmem_cap = (64 if "v7" in kind else 128) * 1024 * 1024
    vmem_limit = int(vmem_cap * 0.78)          # ~50 MiB on v7x, ~100 MiB on v5e/v6e
    rows_target = 256 if "v5" in kind else 512

    weight_bytes = sum(int(v.nbytes) for v in params.values()) // L

    if block_b is None:
        block_b = _choose_block_b(B, T, D_p, Dh_p, FF_p, weight_bytes,
                                  vmem_limit, rows_target)
    assert B % block_b == 0

    if src_key_padding_mask is None:
        mask_add = jnp.zeros((B, 1, T), jnp.float32)
    else:
        mask_add = jnp.where(src_key_padding_mask, -1e30, 0.0).astype(jnp.float32)
        mask_add = mask_add.reshape(B, 1, T)

    x = vid_embeds.astype(jnp.float32)
    if D_p != D:
        x = jnp.pad(x, ((0, 0), (0, 0), (0, D_p - D)))     # lane-dense padded features

    kernel = functools.partial(_encoder_kernel, nhead=nhead, head_dim=hd,
                               head_dim_p=hd_p, d_real=float(D), eps=1e-5)

    def wspec(arr):
        return pl.BlockSpec((1,) + arr.shape[1:], lambda bb, l: (l, 0, 0))

    grid = (B // block_b, L)   # layer axis innermost -> activations resident per block

    flops = L * B * T * (2 * D_p * 3 * Dh_p + 2 * Dh_p * D_p
                         + 4 * D_p * FF_p + 4 * T * Dh_p)
    transc = L * B * nhead * T * T
    bytes_acc = weight_bytes * L * (B // block_b) + 3 * B * T * D_p * 4

    out = pl.pallas_call(
        kernel,
        out_shape=jax.ShapeDtypeStruct((B, T, D_p), jnp.float32),
        grid=grid,
        in_specs=[
            pl.BlockSpec((block_b, T, D_p), lambda bb, l: (bb, 0, 0)),   # x
            pl.BlockSpec((block_b, 1, T), lambda bb, l: (bb, 0, 0)),     # additive mask
            wspec(params["wqkv"]), wspec(params["bqkv"]),
            wspec(params["wo"]), wspec(params["bo"]),
            wspec(params["ln1_g"]), wspec(params["ln1_b"]),
            wspec(params["w1"]), wspec(params["b1"]),
            wspec(params["w2"]), wspec(params["b2"]),
            wspec(params["ln2_g"]), wspec(params["ln2_b"]),
        ],
        out_specs=pl.BlockSpec((block_b, T, D_p), lambda bb, l: (bb, 0, 0)),
        scratch_shapes=[pltpu.VMEM((block_b, T, Dh_p), jnp.bfloat16)],
        compiler_params=pltpu.CompilerParams(
            dimension_semantics=("parallel", "arbitrary"),
            vmem_limit_bytes=vmem_limit),
        cost_estimate=pl.CostEstimate(flops=int(flops), transcendentals=int(transc),
                                      bytes_accessed=int(bytes_acc)),
    )(x, mask_add,
      params["wqkv"], params["bqkv"], params["wo"], params["bo"],
      params["ln1_g"], params["ln1_b"],
      params["w1"], params["b1"], params["w2"], params["b2"],
      params["ln2_g"], params["ln2_b"])

    return out[:, :, :D]


def init_video_encoder_params(key, num_layers, d_model, nhead, dim_feedforward):
    """Deterministic synthetic parameters, stored pre-transposed (x @ W layout),
    stacked over layers, zero-padded to 128-multiple feature dims (including
    per-head dims), and pre-cast to bf16 for the MXU.  Padded gamma/beta and
    weight rows/cols are zero so padding never leaks into the real features."""
    assert d_model % nhead == 0
    hd = d_model // nhead
    hd_p = _round_up(hd, 128)
    D_p = _round_up(d_model, 128)
    Dh_p = nhead * hd_p
    FF_p = _round_up(dim_feedforward, 128)
    L, D, FF = num_layers, d_model, dim_feedforward
    s = 0.02

    def draw(li, idx, shape):
        k = jax.random.fold_in(jax.random.fold_in(key, li), idx)
        return s * jax.random.normal(k, shape, jnp.float32)

    def pad_qkv(w):                      # (D, D) x@W layout, columns head-major
        w = w.reshape(D, nhead, hd)
        out = jnp.zeros((D_p, nhead, hd_p), jnp.float32).at[:D, :, :hd].set(w)
        return out.reshape(D_p, Dh_p)

    def pad_wo(w):                       # (D, D) x@W layout, rows head-major
        w = w.reshape(nhead, hd, D)
        out = jnp.zeros((nhead, hd_p, D_p), jnp.float32).at[:, :hd, :D].set(w)
        return out.reshape(Dh_p, D_p)

    def pad2(w, r, c, R, C):
        return jnp.zeros((R, C), jnp.float32).at[:r, :c].set(w)

    wqkv, wo, w1, w2 = [], [], [], []
    for li in range(L):
        wq = draw(li, 0, (D, D))
        wk = draw(li, 1, (D, D))
        wv = draw(li, 2, (D, D))
        wqkv.append(jnp.concatenate([pad_qkv(wq), pad_qkv(wk), pad_qkv(wv)], axis=-1))
        wo.append(pad_wo(draw(li, 3, (D, D))))
        w1.append(pad2(draw(li, 4, (D, FF)), D, FF, D_p, FF_p))
        w2.append(pad2(draw(li, 5, (FF, D)), FF, D, FF_p, D_p))

    ln_g = jnp.zeros((L, 1, D_p), jnp.float32).at[:, :, :D].set(1.0)
    zeros_D = jnp.zeros((L, 1, D_p), jnp.float32)

    return dict(
        wqkv=jnp.stack(wqkv).astype(jnp.bfloat16),          # (L, D_p, 3*Dh_p)
        bqkv=jnp.zeros((L, 1, 3 * Dh_p), jnp.float32),
        wo=jnp.stack(wo).astype(jnp.bfloat16),              # (L, Dh_p, D_p)
        bo=zeros_D,
        ln1_g=ln_g, ln1_b=zeros_D,
        w1=jnp.stack(w1).astype(jnp.bfloat16),              # (L, D_p, FF_p)
        b1=jnp.zeros((L, 1, FF_p), jnp.float32),
        w2=jnp.stack(w2).astype(jnp.bfloat16),              # (L, FF_p, D_p)
        b2=zeros_D,
        ln2_g=ln_g, ln2_b=zeros_D,
    )


if __name__ == "__main__":
    # Small shapes consistent with the module: (B, T, d_model)
    B, T, d_model = 2, 8, 32
    nhead, num_layers, dim_feedforward = 4, 2, 64

    key = jax.random.PRNGKey(0)
    k_x, k_p = jax.random.split(key)
    vid_embeds = jax.random.normal(k_x, (B, T, d_model), jnp.float32)

    # pad the last two timesteps of the second batch element
    src_key_padding_mask = jnp.zeros((B, T), dtype=bool).at[1, -2:].set(True)

    params = init_video_encoder_params(k_p, num_layers, d_model, nhead, dim_feedforward)

    out = video_encoder_forward(vid_embeds, params, src_key_padding_mask, nhead=nhead)
    out = jax.block_until_ready(out)
    assert out.shape == (B, T, d_model) and out.dtype == jnp.float32
    assert bool(jnp.all(jnp.isfinite(out)))
    print("KERNEL_OK")
</pallas_src>

<mosaic_0001>
module attributes {stable_mosaic.version = 11 : i64} {
  func.func @_encoder_kernel(%arg0: i32, %arg1: i32, %arg2: memref<2x8x128xf32, #tpu.memory_space<vmem>>, %arg3: memref<2x1x8xf32, #tpu.memory_space<vmem>>, %arg4: memref<1x128x1536xbf16, #tpu.memory_space<vmem>>, %arg5: memref<1x1x1536xf32, #tpu.memory_space<vmem>>, %arg6: memref<1x512x128xbf16, #tpu.memory_space<vmem>>, %arg7: memref<1x1x128xf32, #tpu.memory_space<vmem>>, %arg8: memref<1x1x128xf32, #tpu.memory_space<vmem>>, %arg9: memref<1x1x128xf32, #tpu.memory_space<vmem>>, %arg10: memref<1x128x128xbf16, #tpu.memory_space<vmem>>, %arg11: memref<1x1x128xf32, #tpu.memory_space<vmem>>, %arg12: memref<1x128x128xbf16, #tpu.memory_space<vmem>>, %arg13: memref<1x1x128xf32, #tpu.memory_space<vmem>>, %arg14: memref<1x1x128xf32, #tpu.memory_space<vmem>>, %arg15: memref<1x1x128xf32, #tpu.memory_space<vmem>>, %arg16: memref<2x8x128xf32, #tpu.memory_space<vmem>>, %arg17: memref<2x8x512xbf16, #tpu.memory_space<vmem>>) attributes {dimension_semantics = [#tpu.dimension_semantics<parallel>, #tpu.dimension_semantics<arbitrary>], iteration_bounds = array<i64: 1, 2>, scalar_prefetch = 0 : i64, scratch_operands = 1 : i64, tpu.core_type = #tpu.core_type<tc>, window_params = [{transform_indices = @transform_0, window_bounds = array<i64: 2, 8, 128>}, {transform_indices = @transform_1, window_bounds = array<i64: 2, 1, 8>}, {transform_indices = @transform_2, window_bounds = array<i64: 1, 128, 1536>}, {transform_indices = @transform_3, window_bounds = array<i64: 1, 1, 1536>}, {transform_indices = @transform_4, window_bounds = array<i64: 1, 512, 128>}, {transform_indices = @transform_5, window_bounds = array<i64: 1, 1, 128>}, {transform_indices = @transform_6, window_bounds = array<i64: 1, 1, 128>}, {transform_indices = @transform_7, window_bounds = array<i64: 1, 1, 128>}, {transform_indices = @transform_8, window_bounds = array<i64: 1, 128, 128>}, {transform_indices = @transform_9, window_bounds = array<i64: 1, 1, 128>}, {transform_indices = @transform_10, window_bounds = array<i64: 1, 128, 128>}, {transform_indices = @transform_11, window_bounds = array<i64: 1, 1, 128>}, {transform_indices = @transform_12, window_bounds = array<i64: 1, 1, 128>}, {transform_indices = @transform_13, window_bounds = array<i64: 1, 1, 128>}, {transform_indices = @transform_14, window_bounds = array<i64: 2, 8, 128>}]} {
    %c0_i32 = arith.constant 0 : i32
    %0 = arith.cmpi eq, %arg1, %c0_i32 : i32
    %1 = arith.extui %0 : i1 to i32
    %c0_i32_0 = arith.constant 0 : i32
    %2 = arith.cmpi ne, %1, %c0_i32_0 : i32
    scf.if %2 {
      %c0_105 = arith.constant 0 : index
      %c0_106 = arith.constant 0 : index
      %c0_107 = arith.constant 0 : index
      %207 = vector.load %arg2[%c0_105, %c0_106, %c0_107] : memref<2x8x128xf32, #tpu.memory_space<vmem>>, vector<2x8x128xf32>
      %c0_108 = arith.constant 0 : index
      %c0_109 = arith.constant 0 : index
      %c0_110 = arith.constant 0 : index
      %208 = vector.load %arg16[%c0_108, %c0_109, %c0_110] : memref<2x8x128xf32, #tpu.memory_space<vmem>>, vector<2x8x128xf32>
      tpu.vector_store %arg16[%c0_108, %c0_109, %c0_110], %207 {strides = array<i32>} : memref<2x8x128xf32, #tpu.memory_space<vmem>>, vector<2x8x128xf32>,
    } else {
    }
    %c0 = arith.constant 0 : index
    %c0_1 = arith.constant 0 : index
    %c0_2 = arith.constant 0 : index
    %3 = vector.load %arg16[%c0, %c0_1, %c0_2] : memref<2x8x128xf32, #tpu.memory_space<vmem>>, vector<2x8x128xf32>
    %4 = vector.shape_cast %3 : vector<2x8x128xf32> to vector<16x128xf32>
    %5 = arith.truncf %4 : vector<16x128xf32> to vector<16x128xbf16>
    %c0_3 = arith.constant 0 : index
    %c0_4 = arith.constant 0 : index
    %c0_5 = arith.constant 0 : index
    %6 = vector.load %arg4[%c0_3, %c0_4, %c0_5] : memref<1x128x1536xbf16, #tpu.memory_space<vmem>>, vector<1x128x512xbf16>
    %7 = vector.shape_cast %6 : vector<1x128x512xbf16> to vector<128x512xbf16>
    %c0_6 = arith.constant 0 : index
    %c0_7 = arith.constant 0 : index
    %c0_8 = arith.constant 0 : index
    %8 = vector.load %arg5[%c0_6, %c0_7, %c0_8] : memref<1x1x1536xf32, #tpu.memory_space<vmem>>, vector<1x1x512xf32>
    %9 = vector.shape_cast %8 : vector<1x1x512xf32> to vector<1x512xf32>
    %cst = arith.constant dense<0.000000e+00> : vector<16x512xf32>
    %10 = tpu.matmul %5, %7, %cst {dimension_numbers = #tpu.dot_dimension_numbers<[1], [0], [0], [1], [0, 0, 1, 1], [], []>} : vector<16x128xbf16>, vector<128x512xbf16>, vector<16x512xf32> -> vector<16x512xf32>
    %11 = vector.broadcast %9 : vector<1x512xf32> to vector<16x512xf32>
    %12 = arith.addf %10, %11 : vector<16x512xf32>
    %13 = arith.truncf %12 : vector<16x512xf32> to vector<16x512xbf16>
    %14 = vector.shape_cast %13 : vector<16x512xbf16> to vector<2x8x512xbf16>
    %c0_9 = arith.constant 0 : index
    %c0_10 = arith.constant 0 : index
    %c512 = arith.constant 512 : index
    %15 = vector.load %arg4[%c0_9, %c0_10, %c512] : memref<1x128x1536xbf16, #tpu.memory_space<vmem>>, vector<1x128x512xbf16>
    %16 = vector.shape_cast %15 : vector<1x128x512xbf16> to vector<128x512xbf16>
    %c0_11 = arith.constant 0 : index
    %c0_12 = arith.constant 0 : index
    %c512_13 = arith.constant 512 : index
    %17 = vector.load %arg5[%c0_11, %c0_12, %c512_13] : memref<1x1x1536xf32, #tpu.memory_space<vmem>>, vector<1x1x512xf32>
    %18 = vector.shape_cast %17 : vector<1x1x512xf32> to vector<1x512xf32>
    %cst_14 = arith.constant dense<0.000000e+00> : vector<16x512xf32>
    %19 = tpu.matmul %5, %16, %cst_14 {dimension_numbers = #tpu.dot_dimension_numbers<[1], [0], [0], [1], [0, 0, 1, 1], [], []>} : vector<16x128xbf16>, vector<128x512xbf16>, vector<16x512xf32> -> vector<16x512xf32>
    %20 = vector.broadcast %18 : vector<1x512xf32> to vector<16x512xf32>
    %21 = arith.addf %19, %20 : vector<16x512xf32>
    %22 = arith.truncf %21 : vector<16x512xf32> to vector<16x512xbf16>
    %23 = vector.shape_cast %22 : vector<16x512xbf16> to vector<2x8x512xbf16>
    %c0_15 = arith.constant 0 : index
    %c0_16 = arith.constant 0 : index
    %c1024 = arith.constant 1024 : index
    %24 = vector.load %arg4[%c0_15, %c0_16, %c1024] : memref<1x128x1536xbf16, #tpu.memory_space<vmem>>, vector<1x128x512xbf16>
    %25 = vector.shape_cast %24 : vector<1x128x512xbf16> to vector<128x512xbf16>
    %c0_17 = arith.constant 0 : index
    %c0_18 = arith.constant 0 : index
    %c1024_19 = arith.constant 1024 : index
    %26 = vector.load %arg5[%c0_17, %c0_18, %c1024_19] : memref<1x1x1536xf32, #tpu.memory_space<vmem>>, vector<1x1x512xf32>
    %27 = vector.shape_cast %26 : vector<1x1x512xf32> to vector<1x512xf32>
    %cst_20 = arith.constant dense<0.000000e+00> : vector<16x512xf32>
    %28 = tpu.matmul %5, %25, %cst_20 {dimension_numbers = #tpu.dot_dimension_numbers<[1], [0], [0], [1], [0, 0, 1, 1], [], []>} : vector<16x128xbf16>, vector<128x512xbf16>, vector<16x512xf32> -> vector<16x512xf32>
    %29 = vector.broadcast %27 : vector<1x512xf32> to vector<16x512xf32>
    %30 = arith.addf %28, %29 : vector<16x512xf32>
    %31 = arith.truncf %30 : vector<16x512xf32> to vector<16x512xbf16>
    %32 = vector.shape_cast %31 : vector<16x512xbf16> to vector<2x8x512xbf16>
    %c0_21 = arith.constant 0 : index
    %c0_22 = arith.constant 0 : index
    %c0_23 = arith.constant 0 : index
    %33 = vector.load %arg3[%c0_21, %c0_22, %c0_23] : memref<2x1x8xf32, #tpu.memory_space<vmem>>, vector<2x1x8xf32>
    %34 = vector.shape_cast %33 : vector<2x1x8xf32> to vector<2x1x8xf32>
    %35 = vector.broadcast %34 : vector<2x1x8xf32> to vector<2x8x8xf32>
    %36 = vector.extract_strided_slice %14 {offsets = [0, 0, 0], sizes = [2, 8, 128], strides = [1, 1, 1]} : vector<2x8x512xbf16> to vector<2x8x128xbf16>
    %37 = vector.extract_strided_slice %23 {offsets = [0, 0, 0], sizes = [2, 8, 128], strides = [1, 1, 1]} : vector<2x8x512xbf16> to vector<2x8x128xbf16>
    "tpu.trace_start"() <{level = 10 : i32, message = "bqd,bkd->bqk"}> : () -> ()
    %cst_24 = arith.constant dense<0.000000e+00> : vector<2x8x8xf32>
    %38 = tpu.matmul %36, %37, %cst_24 {dimension_numbers = #tpu.dot_dimension_numbers<[2], [2], [1], [1], [0, 0, 0, 1, 1, 1], [0], [0]>} : vector<2x8x128xbf16>, vector<2x8x128xbf16>, vector<2x8x8xf32> -> vector<2x8x8xf32>
    "tpu.trace_stop"() : () -> ()
    %cst_25 = arith.constant 0.353553385 : f32
    %39 = vector.broadcast %cst_25 : f32 to vector<2x8x8xf32>
    %40 = arith.mulf %38, %39 : vector<2x8x8xf32>
    %41 = arith.addf %40, %35 : vector<2x8x8xf32>
    %cst_26 = arith.constant dense<0xFF800000> : vector<2x8xf32>
    %42 = vector.multi_reduction <maximumf>, %41, %cst_26 [2] : vector<2x8x8xf32> to vector<2x8xf32>
    %43 = vector.shape_cast %42 : vector<2x8xf32> to vector<2x8x1xf32>
    %44 = vector.broadcast %43 : vector<2x8x1xf32> to vector<2x8x8xf32>
    %45 = arith.subf %41, %44 : vector<2x8x8xf32>
    %46 = math.exp %45 : vector<2x8x8xf32>
    %cst_27 = arith.constant dense<0.000000e+00> : vector<2x8xf32>
    %47 = vector.multi_reduction <add>, %46, %cst_27 [2] : vector<2x8x8xf32> to vector<2x8xf32>
    %48 = vector.shape_cast %47 : vector<2x8xf32> to vector<2x8x1xf32>
    %49 = tpu.reciprocal %48 {approx = true} : vector<2x8x1xf32> -> vector<2x8x1xf32>
    %50 = vector.broadcast %49 : vector<2x8x1xf32> to vector<2x8x8xf32>
    %51 = arith.mulf %46, %50 : vector<2x8x8xf32>
    %52 = arith.truncf %51 : vector<2x8x8xf32> to vector<2x8x8xbf16>
    %53 = vector.extract_strided_slice %32 {offsets = [0, 0, 0], sizes = [2, 8, 128], strides = [1, 1, 1]} : vector<2x8x512xbf16> to vector<2x8x128xbf16>
    "tpu.trace_start"() <{level = 10 : i32, message = "bqk,bkd->bqd"}> : () -> ()
    %cst_28 = arith.constant dense<0.000000e+00> : vector<2x8x128xf32>
    %54 = tpu.matmul %52, %53, %cst_28 {dimension_numbers = #tpu.dot_dimension_numbers<[2], [1], [1], [2], [0, 0, 0, 1, 1, 2], [0], [0]>} : vector<2x8x8xbf16>, vector<2x8x128xbf16>, vector<2x8x128xf32> -> vector<2x8x128xf32>
    "tpu.trace_stop"() : () -> ()
    %55 = arith.truncf %54 : vector<2x8x128xf32> to vector<2x8x128xbf16>
    %c0_29 = arith.constant 0 : index
    %c0_30 = arith.constant 0 : index
    %c0_31 = arith.constant 0 : index
    %56 = vector.load %arg17[%c0_29, %c0_30, %c0_31] : memref<2x8x512xbf16, #tpu.memory_space<vmem>>, vector<2x8x128xbf16>
    tpu.vector_store %arg17[%c0_29, %c0_30, %c0_31], %55 {strides = array<i32>} : memref<2x8x512xbf16, #tpu.memory_space<vmem>>, vector<2x8x128xbf16>,
    %57 = vector.extract_strided_slice %14 {offsets = [0, 0, 128], sizes = [2, 8, 128], strides = [1, 1, 1]} : vector<2x8x512xbf16> to vector<2x8x128xbf16>
    %58 = vector.extract_strided_slice %23 {offsets = [0, 0, 128], sizes = [2, 8, 128], strides = [1, 1, 1]} : vector<2x8x512xbf16> to vector<2x8x128xbf16>
    "tpu.trace_start"() <{level = 10 : i32, message = "bqd,bkd->bqk"}> : () -> ()
    %cst_32 = arith.constant dense<0.000000e+00> : vector<2x8x8xf32>
    %59 = tpu.matmul %57, %58, %cst_32 {dimension_numbers = #tpu.dot_dimension_numbers<[2], [2], [1], [1], [0, 0, 0, 1, 1, 1], [0], [0]>} : vector<2x8x128xbf16>, vector<2x8x128xbf16>, vector<2x8x8xf32> -> vector<2x8x8xf32>
    "tpu.trace_stop"() : () -> ()
    %cst_33 = arith.constant 0.353553385 : f32
    %60 = vector.broadcast %cst_33 : f32 to vector<2x8x8xf32>
    %61 = arith.mulf %59, %60 : vector<2x8x8xf32>
    %62 = arith.addf %61, %35 : vector<2x8x8xf32>
    %cst_34 = arith.constant dense<0xFF800000> : vector<2x8xf32>
    %63 = vector.multi_reduction <maximumf>, %62, %cst_34 [2] : vector<2x8x8xf32> to vector<2x8xf32>
    %64 = vector.shape_cast %63 : vector<2x8xf32> to vector<2x8x1xf32>
    %65 = vector.broadcast %64 : vector<2x8x1xf32> to vector<2x8x8xf32>
    %66 = arith.subf %62, %65 : vector<2x8x8xf32>
    %67 = math.exp %66 : vector<2x8x8xf32>
    %cst_35 = arith.constant dense<0.000000e+00> : vector<2x8xf32>
    %68 = vector.multi_reduction <add>, %67, %cst_35 [2] : vector<2x8x8xf32> to vector<2x8xf32>
    %69 = vector.shape_cast %68 : vector<2x8xf32> to vector<2x8x1xf32>
    %70 = tpu.reciprocal %69 {approx = true} : vector<2x8x1xf32> -> vector<2x8x1xf32>
    %71 = vector.broadcast %70 : vector<2x8x1xf32> to vector<2x8x8xf32>
    %72 = arith.mulf %67, %71 : vector<2x8x8xf32>
    %73 = arith.truncf %72 : vector<2x8x8xf32> to vector<2x8x8xbf16>
    %74 = vector.extract_strided_slice %32 {offsets = [0, 0, 128], sizes = [2, 8, 128], strides = [1, 1, 1]} : vector<2x8x512xbf16> to vector<2x8x128xbf16>
    "tpu.trace_start"() <{level = 10 : i32, message = "bqk,bkd->bqd"}> : () -> ()
    %cst_36 = arith.constant dense<0.000000e+00> : vector<2x8x128xf32>
    %75 = tpu.matmul %73, %74, %cst_36 {dimension_numbers = #tpu.dot_dimension_numbers<[2], [1], [1], [2], [0, 0, 0, 1, 1, 2], [0], [0]>} : vector<2x8x8xbf16>, vector<2x8x128xbf16>, vector<2x8x128xf32> -> vector<2x8x128xf32>
    "tpu.trace_stop"() : () -> ()
    %76 = arith.truncf %75 : vector<2x8x128xf32> to vector<2x8x128xbf16>
    %c0_37 = arith.constant 0 : index
    %c0_38 = arith.constant 0 : index
    %c128 = arith.constant 128 : index
    %77 = vector.load %arg17[%c0_37, %c0_38, %c128] : memref<2x8x512xbf16, #tpu.memory_space<vmem>>, vector<2x8x128xbf16>
    tpu.vector_store %arg17[%c0_37, %c0_38, %c128], %76 {strides = array<i32>} : memref<2x8x512xbf16, #tpu.memory_space<vmem>>, vector<2x8x128xbf16>,
    %78 = vector.extract_strided_slice %14 {offsets = [0, 0, 256], sizes = [2, 8, 128], strides = [1, 1, 1]} : vector<2x8x512xbf16> to vector<2x8x128xbf16>
    %79 = vector.extract_strided_slice %23 {offsets = [0, 0, 256], sizes = [2, 8, 128], strides = [1, 1, 1]} : vector<2x8x512xbf16> to vector<2x8x128xbf16>
    "tpu.trace_start"() <{level = 10 : i32, message = "bqd,bkd->bqk"}> : () -> ()
    %cst_39 = arith.constant dense<0.000000e+00> : vector<2x8x8xf32>
    %80 = tpu.matmul %78, %79, %cst_39 {dimension_numbers = #tpu.dot_dimension_numbers<[2], [2], [1], [1], [0, 0, 0, 1, 1, 1], [0], [0]>} : vector<2x8x128xbf16>, vector<2x8x128xbf16>, vector<2x8x8xf32> -> vector<2x8x8xf32>
    "tpu.trace_stop"() : () -> ()
    %cst_40 = arith.constant 0.353553385 : f32
    %81 = vector.broadcast %cst_40 : f32 to vector<2x8x8xf32>
    %82 = arith.mulf %80, %81 : vector<2x8x8xf32>
    %83 = arith.addf %82, %35 : vector<2x8x8xf32>
    %cst_41 = arith.constant dense<0xFF800000> : vector<2x8xf32>
    %84 = vector.multi_reduction <maximumf>, %83, %cst_41 [2] : vector<2x8x8xf32> to vector<2x8xf32>
    %85 = vector.shape_cast %84 : vector<2x8xf32> to vector<2x8x1xf32>
    %86 = vector.broadcast %85 : vector<2x8x1xf32> to vector<2x8x8xf32>
    %87 = arith.subf %83, %86 : vector<2x8x8xf32>
    %88 = math.exp %87 : vector<2x8x8xf32>
    %cst_42 = arith.constant dense<0.000000e+00> : vector<2x8xf32>
    %89 = vector.multi_reduction <add>, %88, %cst_42 [2] : vector<2x8x8xf32> to vector<2x8xf32>
    %90 = vector.shape_cast %89 : vector<2x8xf32> to vector<2x8x1xf32>
    %91 = tpu.reciprocal %90 {approx = true} : vector<2x8x1xf32> -> vector<2x8x1xf32>
    %92 = vector.broadcast %91 : vector<2x8x1xf32> to vector<2x8x8xf32>
    %93 = arith.mulf %88, %92 : vector<2x8x8xf32>
    %94 = arith.truncf %93 : vector<2x8x8xf32> to vector<2x8x8xbf16>
    %95 = vector.extract_strided_slice %32 {offsets = [0, 0, 256], sizes = [2, 8, 128], strides = [1, 1, 1]} : vector<2x8x512xbf16> to vector<2x8x128xbf16>
    "tpu.trace_start"() <{level = 10 : i32, message = "bqk,bkd->bqd"}> : () -> ()
    %cst_43 = arith.constant dense<0.000000e+00> : vector<2x8x128xf32>
    %96 = tpu.matmul %94, %95, %cst_43 {dimension_numbers = #tpu.dot_dimension_numbers<[2], [1], [1], [2], [0, 0, 0, 1, 1, 2], [0], [0]>} : vector<2x8x8xbf16>, vector<2x8x128xbf16>, vector<2x8x128xf32> -> vector<2x8x128xf32>
    "tpu.trace_stop"() : () -> ()
    %97 = arith.truncf %96 : vector<2x8x128xf32> to vector<2x8x128xbf16>
    %c0_44 = arith.constant 0 : index
    %c0_45 = arith.constant 0 : index
    %c256 = arith.constant 256 : index
    %98 = vector.load %arg17[%c0_44, %c0_45, %c256] : memref<2x8x512xbf16, #tpu.memory_space<vmem>>, vector<2x8x128xbf16>
    tpu.vector_store %arg17[%c0_44, %c0_45, %c256], %97 {strides = array<i32>} : memref<2x8x512xbf16, #tpu.memory_space<vmem>>, vector<2x8x128xbf16>,
    %99 = vector.extract_strided_slice %14 {offsets = [0, 0, 384], sizes = [2, 8, 128], strides = [1, 1, 1]} : vector<2x8x512xbf16> to vector<2x8x128xbf16>
    %100 = vector.extract_strided_slice %23 {offsets = [0, 0, 384], sizes = [2, 8, 128], strides = [1, 1, 1]} : vector<2x8x512xbf16> to vector<2x8x128xbf16>
    "tpu.trace_start"() <{level = 10 : i32, message = "bqd,bkd->bqk"}> : () -> ()
    %cst_46 = arith.constant dense<0.000000e+00> : vector<2x8x8xf32>
    %101 = tpu.matmul %99, %100, %cst_46 {dimension_numbers = #tpu.dot_dimension_numbers<[2], [2], [1], [1], [0, 0, 0, 1, 1, 1], [0], [0]>} : vector<2x8x128xbf16>, vector<2x8x128xbf16>, vector<2x8x8xf32> -> vector<2x8x8xf32>
    "tpu.trace_stop"() : () -> ()
    %cst_47 = arith.constant 0.353553385 : f32
    %102 = vector.broadcast %cst_47 : f32 to vector<2x8x8xf32>
    %103 = arith.mulf %101, %102 : vector<2x8x8xf32>
    %104 = arith.addf %103, %35 : vector<2x8x8xf32>
    %cst_48 = arith.constant dense<0xFF800000> : vector<2x8xf32>
    %105 = vector.multi_reduction <maximumf>, %104, %cst_48 [2] : vector<2x8x8xf32> to vector<2x8xf32>
    %106 = vector.shape_cast %105 : vector<2x8xf32> to vector<2x8x1xf32>
    %107 = vector.broadcast %106 : vector<2x8x1xf32> to vector<2x8x8xf32>
    %108 = arith.subf %104, %107 : vector<2x8x8xf32>
    %109 = math.exp %108 : vector<2x8x8xf32>
    %cst_49 = arith.constant dense<0.000000e+00> : vector<2x8xf32>
    %110 = vector.multi_reduction <add>, %109, %cst_49 [2] : vector<2x8x8xf32> to vector<2x8xf32>
    %111 = vector.shape_cast %110 : vector<2x8xf32> to vector<2x8x1xf32>
    %112 = tpu.reciprocal %111 {approx = true} : vector<2x8x1xf32> -> vector<2x8x1xf32>
    %113 = vector.broadcast %112 : vector<2x8x1xf32> to vector<2x8x8xf32>
    %114 = arith.mulf %109, %113 : vector<2x8x8xf32>
    %115 = arith.truncf %114 : vector<2x8x8xf32> to vector<2x8x8xbf16>
    %116 = vector.extract_strided_slice %32 {offsets = [0, 0, 384], sizes = [2, 8, 128], strides = [1, 1, 1]} : vector<2x8x512xbf16> to vector<2x8x128xbf16>
    "tpu.trace_start"() <{level = 10 : i32, message = "bqk,bkd->bqd"}> : () -> ()
    %cst_50 = arith.constant dense<0.000000e+00> : vector<2x8x128xf32>
    %117 = tpu.matmul %115, %116, %cst_50 {dimension_numbers = #tpu.dot_dimension_numbers<[2], [1], [1], [2], [0, 0, 0, 1, 1, 2], [0], [0]>} : vector<2x8x8xbf16>, vector<2x8x128xbf16>, vector<2x8x128xf32> -> vector<2x8x128xf32>
    "tpu.trace_stop"() : () -> ()
    %118 = arith.truncf %117 : vector<2x8x128xf32> to vector<2x8x128xbf16>
    %c0_51 = arith.constant 0 : index
    %c0_52 = arith.constant 0 : index
    %c384 = arith.constant 384 : index
    %119 = vector.load %arg17[%c0_51, %c0_52, %c384] : memref<2x8x512xbf16, #tpu.memory_space<vmem>>, vector<2x8x128xbf16>
    tpu.vector_store %arg17[%c0_51, %c0_52, %c384], %118 {strides = array<i32>} : memref<2x8x512xbf16, #tpu.memory_space<vmem>>, vector<2x8x128xbf16>,
    %c0_53 = arith.constant 0 : index
    %c0_54 = arith.constant 0 : index
    %c0_55 = arith.constant 0 : index
    %120 = vector.load %arg17[%c0_53, %c0_54, %c0_55] : memref<2x8x512xbf16, #tpu.memory_space<vmem>>, vector<2x8x512xbf16>
    %121 = vector.shape_cast %120 : vector<2x8x512xbf16> to vector<16x512xbf16>
    %c0_56 = arith.constant 0 : index
    %c0_57 = arith.constant 0 : index
    %c0_58 = arith.constant 0 : index
    %122 = vector.load %arg6[%c0_56, %c0_57, %c0_58] : memref<1x512x128xbf16, #tpu.memory_space<vmem>>, vector<1x512x128xbf16>
    %123 = vector.shape_cast %122 : vector<1x512x128xbf16> to vector<512x128xbf16>
    %cst_59 = arith.constant dense<0.000000e+00> : vector<16x128xf32>
    %124 = tpu.matmul %121, %123, %cst_59 {dimension_numbers = #tpu.dot_dimension_numbers<[1], [0], [0], [1], [0, 0, 1, 1], [], []>} : vector<16x512xbf16>, vector<512x128xbf16>, vector<16x128xf32> -> vector<16x128xf32>
    %c0_60 = arith.constant 0 : index
    %c0_61 = arith.constant 0 : index
    %c0_62 = arith.constant 0 : index
    %125 = vector.load %arg7[%c0_60, %c0_61, %c0_62] : memref<1x1x128xf32, #tpu.memory_space<vmem>>, vector<1x1x128xf32>
    %126 = vector.shape_cast %125 : vector<1x1x128xf32> to vector<1x128xf32>
    %127 = vector.broadcast %126 : vector<1x128xf32> to vector<16x128xf32>
    %128 = arith.addf %124, %127 : vector<16x128xf32>
    %129 = arith.addf %4, %128 : vector<16x128xf32>
    %cst_63 = arith.constant dense<0.000000e+00> : vector<16xf32>
    %130 = vector.multi_reduction <add>, %129, %cst_63 [1] : vector<16x128xf32> to vector<16xf32>
    %131 = vector.shape_cast %130 : vector<16xf32> to vector<16x1xf32>
    %cst_64 = arith.constant 3.125000e-02 : f32
    %132 = vector.broadcast %cst_64 : f32 to vector<16x1xf32>
    %133 = arith.mulf %131, %132 : vector<16x1xf32>
    %134 = arith.mulf %129, %129 : vector<16x128xf32>
    %cst_65 = arith.constant dense<0.000000e+00> : vector<16xf32>
    %135 = vector.multi_reduction <add>, %134, %cst_65 [1] : vector<16x128xf32> to vector<16xf32>
    %136 = vector.shape_cast %135 : vector<16xf32> to vector<16x1xf32>
    %cst_66 = arith.constant 3.125000e-02 : f32
    %137 = vector.broadcast %cst_66 : f32 to vector<16x1xf32>
    %138 = arith.mulf %136, %137 : vector<16x1xf32>
    %139 = arith.mulf %133, %133 : vector<16x1xf32>
    %140 = arith.subf %138, %139 : vector<16x1xf32>
    %cst_67 = arith.constant 0.000000e+00 : f32
    %141 = vector.broadcast %cst_67 : f32 to vector<16x1xf32>
    %142 = arith.maximumf %140, %141 : vector<16x1xf32>
    %143 = vector.broadcast %133 : vector<16x1xf32> to vector<16x128xf32>
    %144 = arith.subf %129, %143 : vector<16x128xf32>
    %cst_68 = arith.constant 9.99999974E-6 : f32
    %145 = vector.broadcast %cst_68 : f32 to vector<16x1xf32>
    %146 = arith.addf %142, %145 : vector<16x1xf32>
    %147 = math.rsqrt %146 : vector<16x1xf32>
    %148 = vector.broadcast %147 : vector<16x1xf32> to vector<16x128xf32>
    %149 = arith.mulf %144, %148 : vector<16x128xf32>
    %c0_69 = arith.constant 0 : index
    %c0_70 = arith.constant 0 : index
    %c0_71 = arith.constant 0 : index
    %150 = vector.load %arg8[%c0_69, %c0_70, %c0_71] : memref<1x1x128xf32, #tpu.memory_space<vmem>>, vector<1x1x128xf32>
    %151 = vector.shape_cast %150 : vector<1x1x128xf32> to vector<1x128xf32>
    %152 = vector.broadcast %151 : vector<1x128xf32> to vector<16x128xf32>
    %153 = arith.mulf %149, %152 : vector<16x128xf32>
    %c0_72 = arith.constant 0 : index
    %c0_73 = arith.constant 0 : index
    %c0_74 = arith.constant 0 : index
    %154 = vector.load %arg9[%c0_72, %c0_73, %c0_74] : memref<1x1x128xf32, #tpu.memory_space<vmem>>, vector<1x1x128xf32>
    %155 = vector.shape_cast %154 : vector<1x1x128xf32> to vector<1x128xf32>
    %156 = vector.broadcast %155 : vector<1x128xf32> to vector<16x128xf32>
    %157 = arith.addf %153, %156 : vector<16x128xf32>
    %158 = arith.truncf %157 : vector<16x128xf32> to vector<16x128xbf16>
    %c0_75 = arith.constant 0 : index
    %c0_76 = arith.constant 0 : index
    %c0_77 = arith.constant 0 : index
    %159 = vector.load %arg10[%c0_75, %c0_76, %c0_77] : memref<1x128x128xbf16, #tpu.memory_space<vmem>>, vector<1x128x128xbf16>
    %160 = vector.shape_cast %159 : vector<1x128x128xbf16> to vector<128x128xbf16>
    %cst_78 = arith.constant dense<0.000000e+00> : vector<16x128xf32>
    %161 = tpu.matmul %158, %160, %cst_78 {dimension_numbers = #tpu.dot_dimension_numbers<[1], [0], [0], [1], [0, 0, 1, 1], [], []>} : vector<16x128xbf16>, vector<128x128xbf16>, vector<16x128xf32> -> vector<16x128xf32>
    %c0_79 = arith.constant 0 : index
    %c0_80 = arith.constant 0 : index
    %c0_81 = arith.constant 0 : index
    %162 = vector.load %arg11[%c0_79, %c0_80, %c0_81] : memref<1x1x128xf32, #tpu.memory_space<vmem>>, vector<1x1x128xf32>
    %163 = vector.shape_cast %162 : vector<1x1x128xf32> to vector<1x128xf32>
    %164 = vector.broadcast %163 : vector<1x128xf32> to vector<16x128xf32>
    %165 = arith.addf %161, %164 : vector<16x128xf32>
    %cst_82 = arith.constant 0.000000e+00 : f32
    %166 = vector.broadcast %cst_82 : f32 to vector<16x128xf32>
    %167 = arith.maximumf %165, %166 : vector<16x128xf32>
    %168 = arith.truncf %167 : vector<16x128xf32> to vector<16x128xbf16>
    %c0_83 = arith.constant 0 : index
    %c0_84 = arith.constant 0 : index
    %c0_85 = arith.constant 0 : index
    %169 = vector.load %arg12[%c0_83, %c0_84, %c0_85] : memref<1x128x128xbf16, #tpu.memory_space<vmem>>, vector<1x128x128xbf16>
    %170 = vector.shape_cast %169 : vector<1x128x128xbf16> to vector<128x128xbf16>
    %cst_86 = arith.constant dense<0.000000e+00> : vector<16x128xf32>
    %171 = tpu.matmul %168, %170, %cst_86 {dimension_numbers = #tpu.dot_dimension_numbers<[1], [0], [0], [1], [0, 0, 1, 1], [], []>} : vector<16x128xbf16>, vector<128x128xbf16>, vector<16x128xf32> -> vector<16x128xf32>
    %c0_87 = arith.constant 0 : index
    %c0_88 = arith.constant 0 : index
    %c0_89 = arith.constant 0 : index
    %172 = vector.load %arg13[%c0_87, %c0_88, %c0_89] : memref<1x1x128xf32, #tpu.memory_space<vmem>>, vector<1x1x128xf32>
    %173 = vector.shape_cast %172 : vector<1x1x128xf32> to vector<1x128xf32>
    %174 = vector.broadcast %173 : vector<1x128xf32> to vector<16x128xf32>
    %175 = arith.addf %171, %174 : vector<16x128xf32>
    %176 = arith.addf %157, %175 : vector<16x128xf32>
    %cst_90 = arith.constant dense<0.000000e+00> : vector<16xf32>
    %177 = vector.multi_reduction <add>, %176, %cst_90 [1] : vector<16x128xf32> to vector<16xf32>
    %178 = vector.shape_cast %177 : vector<16xf32> to vector<16x1xf32>
    %cst_91 = arith.constant 3.125000e-02 : f32
    %179 = vector.broadcast %cst_91 : f32 to vector<16x1xf32>
    %180 = arith.mulf %178, %179 : vector<16x1xf32>
    %181 = arith.mulf %176, %176 : vector<16x128xf32>
    %cst_92 = arith.constant dense<0.000000e+00> : vector<16xf32>
    %182 = vector.multi_reduction <add>, %181, %cst_92 [1] : vector<16x128xf32> to vector<16xf32>
    %183 = vector.shape_cast %182 : vector<16xf32> to vector<16x1xf32>
    %cst_93 = arith.constant 3.125000e-02 : f32
    %184 = vector.broadcast %cst_93 : f32 to vector<16x1xf32>
    %185 = arith.mulf %183, %184 : vector<16x1xf32>
    %186 = arith.mulf %180, %180 : vector<16x1xf32>
    %187 = arith.subf %185, %186 : vector<16x1xf32>
    %cst_94 = arith.constant 0.000000e+00 : f32
    %188 = vector.broadcast %cst_94 : f32 to vector<16x1xf32>
    %189 = arith.maximumf %187, %188 : vector<16x1xf32>
    %190 = vector.broadcast %180 : vector<16x1xf32> to vector<16x128xf32>
    %191 = arith.subf %176, %190 : vector<16x128xf32>
    %cst_95 = arith.constant 9.99999974E-6 : f32
    %192 = vector.broadcast %cst_95 : f32 to vector<16x1xf32>
    %193 = arith.addf %189, %192 : vector<16x1xf32>
    %194 = math.rsqrt %193 : vector<16x1xf32>
    %195 = vector.broadcast %194 : vector<16x1xf32> to vector<16x128xf32>
    %196 = arith.mulf %191, %195 : vector<16x128xf32>
    %c0_96 = arith.constant 0 : index
    %c0_97 = arith.constant 0 : index
    %c0_98 = arith.constant 0 : index
    %197 = vector.load %arg14[%c0_96, %c0_97, %c0_98] : memref<1x1x128xf32, #tpu.memory_space<vmem>>, vector<1x1x128xf32>
    %198 = vector.shape_cast %197 : vector<1x1x128xf32> to vector<1x128xf32>
    %199 = vector.broadcast %198 : vector<1x128xf32> to vector<16x128xf32>
    %200 = arith.mulf %196, %199 : vector<16x128xf32>
    %c0_99 = arith.constant 0 : index
    %c0_100 = arith.constant 0 : index
    %c0_101 = arith.constant 0 : index
    %201 = vector.load %arg15[%c0_99, %c0_100, %c0_101] : memref<1x1x128xf32, #tpu.memory_space<vmem>>, vector<1x1x128xf32>
    %202 = vector.shape_cast %201 : vector<1x1x128xf32> to vector<1x128xf32>
    %203 = vector.broadcast %202 : vector<1x128xf32> to vector<16x128xf32>
    %204 = arith.addf %200, %203 : vector<16x128xf32>
    %205 = vector.shape_cast %204 : vector<16x128xf32> to vector<2x8x128xf32>
    %c0_102 = arith.constant 0 : index
    %c0_103 = arith.constant 0 : index
    %c0_104 = arith.constant 0 : index
    %206 = vector.load %arg16[%c0_102, %c0_103, %c0_104] : memref<2x8x128xf32, #tpu.memory_space<vmem>>, vector<2x8x128xf32>
    tpu.vector_store %arg16[%c0_102, %c0_103, %c0_104], %205 {strides = array<i32>} : memref<2x8x128xf32, #tpu.memory_space<vmem>>, vector<2x8x128xf32>,
    return
  }
  func.func @transform_0(%arg0: i32, %arg1: i32) -> (i32, i32, i32) {
    %c0_i32 = arith.constant 0 : i32
    %c0_i32_0 = arith.constant 0 : i32
    %c0_i32_1 = arith.constant 0 : i32
    return %arg0, %c0_i32, %c0_i32_0 : i32, i32, i32
  }
  func.func @transform_1(%arg0: i32, %arg1: i32) -> (i32, i32, i32) {
    %c0_i32 = arith.constant 0 : i32
    %c0_i32_0 = arith.constant 0 : i32
    %c0_i32_1 = arith.constant 0 : i32
    return %arg0, %c0_i32, %c0_i32_0 : i32, i32, i32
  }
  func.func @transform_2(%arg0: i32, %arg1: i32) -> (i32, i32, i32) {
    %c0_i32 = arith.constant 0 : i32
    %c0_i32_0 = arith.constant 0 : i32
    %c0_i32_1 = arith.constant 0 : i32
    return %arg1, %c0_i32, %c0_i32_0 : i32, i32, i32
  }
  func.func @transform_3(%arg0: i32, %arg1: i32) -> (i32, i32, i32) {
    %c0_i32 = arith.constant 0 : i32
    %c0_i32_0 = arith.constant 0 : i32
    %c0_i32_1 = arith.constant 0 : i32
    return %arg1, %c0_i32, %c0_i32_0 : i32, i32, i32
  }
  func.func @transform_4(%arg0: i32, %arg1: i32) -> (i32, i32, i32) {
    %c0_i32 = arith.constant 0 : i32
    %c0_i32_0 = arith.constant 0 : i32
    %c0_i32_1 = arith.constant 0 : i32
    return %arg1, %c0_i32, %c0_i32_0 : i32, i32, i32
  }
  func.func @transform_5(%arg0: i32, %arg1: i32) -> (i32, i32, i32) {
    %c0_i32 = arith.constant 0 : i32
    %c0_i32_0 = arith.constant 0 : i32
    %c0_i32_1 = arith.constant 0 : i32
    return %arg1, %c0_i32, %c0_i32_0 : i32, i32, i32
  }
  func.func @transform_6(%arg0: i32, %arg1: i32) -> (i32, i32, i32) {
    %c0_i32 = arith.constant 0 : i32
    %c0_i32_0 = arith.constant 0 : i32
    %c0_i32_1 = arith.constant 0 : i32
    return %arg1, %c0_i32, %c0_i32_0 : i32, i32, i32
  }
  func.func @transform_7(%arg0: i32, %arg1: i32) -> (i32, i32, i32) {
    %c0_i32 = arith.constant 0 : i32
    %c0_i32_0 = arith.constant 0 : i32
    %c0_i32_1 = arith.constant 0 : i32
    return %arg1, %c0_i32, %c0_i32_0 : i32, i32, i32
  }
  func.func @transform_8(%arg0: i32, %arg1: i32) -> (i32, i32, i32) {
    %c0_i32 = arith.constant 0 : i32
    %c0_i32_0 = arith.constant 0 : i32
    %c0_i32_1 = arith.constant 0 : i32
    return %arg1, %c0_i32, %c0_i32_0 : i32, i32, i32
  }
  func.func @transform_9(%arg0: i32, %arg1: i32) -> (i32, i32, i32) {
    %c0_i32 = arith.constant 0 : i32
    %c0_i32_0 = arith.constant 0 : i32
    %c0_i32_1 = arith.constant 0 : i32
    return %arg1, %c0_i32, %c0_i32_0 : i32, i32, i32
  }
  func.func @transform_10(%arg0: i32, %arg1: i32) -> (i32, i32, i32) {
    %c0_i32 = arith.constant 0 : i32
    %c0_i32_0 = arith.constant 0 : i32
    %c0_i32_1 = arith.constant 0 : i32
    return %arg1, %c0_i32, %c0_i32_0 : i32, i32, i32
  }
  func.func @transform_11(%arg0: i32, %arg1: i32) -> (i32, i32, i32) {
    %c0_i32 = arith.constant 0 : i32
    %c0_i32_0 = arith.constant 0 : i32
    %c0_i32_1 = arith.constant 0 : i32
    return %arg1, %c0_i32, %c0_i32_0 : i32, i32, i32
  }
  func.func @transform_12(%arg0: i32, %arg1: i32) -> (i32, i32, i32) {
    %c0_i32 = arith.constant 0 : i32
    %c0_i32_0 = arith.constant 0 : i32
    %c0_i32_1 = arith.constant 0 : i32
    return %arg1, %c0_i32, %c0_i32_0 : i32, i32, i32
  }
  func.func @transform_13(%arg0: i32, %arg1: i32) -> (i32, i32, i32) {
    %c0_i32 = arith.constant 0 : i32
    %c0_i32_0 = arith.constant 0 : i32
    %c0_i32_1 = arith.constant 0 : i32
    return %arg1, %c0_i32, %c0_i32_0 : i32, i32, i32
  }
  func.func @transform_14(%arg0: i32, %arg1: i32) -> (i32, i32, i32) {
    %c0_i32 = arith.constant 0 : i32
    %c0_i32_0 = arith.constant 0 : i32
    %c0_i32_1 = arith.constant 0 : i32
    return %arg0, %c0_i32, %c0_i32_0 : i32, i32, i32
  }
}

</mosaic_0001>

<bundles_post_ra>
// kernel: tpu_custom_call.1
= control target key start
LH: loop header
LB: loop body
LE: loop exit
PB: predicated region body
PF: predicated region fallthrough
CT: control target
= control target key end

     0   :  { %s6088_s0 = inlined_call_operand.hbm [shape: f32[2,8,128], index: 0, kind: input, shape index: {}]   ;;  %s6089_s1 = inlined_call_operand.hbm [shape: f32[2,1,8], index: 1, kind: input, shape index: {}]   ;;  %s6090_s2 = inlined_call_operand.hbm [shape: bf16[2,128,1536], index: 2, kind: input, shape index: {}]   ;;  %s6091_s3 = inlined_call_operand.hbm [shape: f32[2,1,1536], index: 3, kind: input, shape index: {}]   ;;  %s6092_s4 = inlined_call_operand.hbm [shape: bf16[2,512,128], index: 4, kind: input, shape index: {}]   ;;  %s6093_s5 = inlined_call_operand.hbm [shape: f32[2,1,128], index: 5, kind: input, shape index: {}]   ;;  %s6094_s6 = inlined_call_operand.hbm [shape: f32[2,1,128], index: 6, kind: input, shape index: {}]   ;;  %s6095_s7 = inlined_call_operand.hbm [shape: f32[2,1,128], index: 7, kind: input, shape index: {}]   ;;  %s6096_s8 = inlined_call_operand.hbm [shape: bf16[2,128,128], index: 8, kind: input, shape index: {}]   ;;  %s6097_s9 = inlined_call_operand.hbm [shape: f32[2,1,128], index: 9, kind: input, shape index: {}]   ;;  %s6098_s10 = inlined_call_operand.hbm [shape: bf16[2,128,128], index: 10, kind: input, shape index: {}]   ;;  %s6099_s11 = inlined_call_operand.hbm [shape: f32[2,1,128], index: 11, kind: input, shape index: {}]   ;;  %s6100_s12 = inlined_call_operand.hbm [shape: f32[2,1,128], index: 12, kind: input, shape index: {}]   ;;  %s6101_s13 = inlined_call_operand.hbm [shape: f32[2,1,128], index: 13, kind: input, shape index: {}]   ;;  %s6102_s14 = inlined_call_operand.hbm [shape: f32[2,8,128], index: 14, kind: output, shape index: {}]  }
   0x1   :  { %6133 = sst [smem:[#allocation35_spill]] %s6088_s0 }
   0x2   :  { %6134 = sst [smem:[#allocation36_spill]] %s6089_s1 }
   0x3   :  { %6135 = sst [smem:[#allocation37_spill]] %s6090_s2 }
   0x4   :  { %6136 = sst [smem:[#allocation38_spill]] %s6091_s3 }
   0x5   :  { %6137 = sst [smem:[#allocation39_spill]] %s6101_s13 }
   0x6   :  { %6138 = sst [smem:[#allocation40_spill]] %s6102_s14 }
   0x7   :  { %19 = vsyncpa [#allocation4], 0 }
   0x8   :  { %20 = vsyncpa [#allocation7], 0 }
   0x9   :  { %21 = vsyncpa [#allocation5], 0  ;;  %s5184_s29 = smov 0   ;;  %s5186_s30 = smov 0  }
   0xa   :  { %s5188_s15 = smov 0   ;;  %s5190_s16 = smov 0  }
   0xb   :  { %s5192_s17 = smov 0   ;;  %s5194_s18 = smov 0  }
   0xc LB: > { %6139 = sst [smem:[#allocation25_spill]] %s5063_s30  ;;  %s5213_s19 = sadd.s32 4294967295, %s5079_s18   ;;  %s5079_s18 = sphi %s5194_s18, %s27_s18   ;;  %s5075_s17 = sphi %s5192_s17, %s6196_s17   ;;  %s5071_s16 = sphi %s5190_s16, %s6195_s16   ;;  %s5067_s15 = sphi %s5188_s15, %s6193_s15   ;;  %s5063_s30 = sphi %s5186_s30, %s6192_s30   ;;  %s5059_s29 = sphi %s5184_s29, %s6191_s29  }
   0xd   : > { %6140 = sst [smem:[#allocation26_spill]] %s5067_s15  ;;  %s36_s20 = sadd.s32 1, %s5075_s17 }
   0xe   : > { %6141 = sst [smem:[#allocation27_spill]] %s5071_s16  ;;  %p37_p0 = scmp.ge.s32.totalorder %s36_s20, 2 }
   0xf   : > { %6142 = sst [smem:[#allocation28_spill]] %s5079_s18  ;;  %s98_s21 = sadd.s32 1, %s5067_s15 }
  0x10   : > { %6143 = sst [smem:[#allocation29_spill]] %s5213_s19  ;;  %p105_p1 = scmp.ne.s32.totalorder %s5067_s15, %s5063_s30 }
  0x11   : > { %p106_p2 = scmp.eq.s32.totalorder %s5079_s18, 0  ;;  %s6198_s20 = smov (%p37_p0, %s36_s20), 0 }
  0x12   : > { %6144 = sst [smem:[#allocation30_spill]] %s6198_s20  ;;  %p111_p4 = scmp.ne.s32.totalorder %s5063_s30, %s5059_s29 }
  0x13   : > { %p5222_p3 = por %p106_p2, %p105_p1  ;;  %s95_s23 = ssub.s32 %s5075_s17, %s6198_s20 }
  0x14   : > { %p6107_p5 = scmp.eq.s32.totalorder %s5213_s19, 0  ;;  %p96_p6 = scmp.eq.s32.totalorder %s95_s23, 0 }
  0x15   : > { %s6145_s22 = scalar_select %p5222_p3, 1, 0 }
  0x16   : > { %p3723_p7 = scmp.ge.s32.totalorder %s5079_s18, 1  ;;  %p5233_p8 = por %p6107_p5, %p111_p4 }
  0x17   : > { %p434_p9 = scmp.lt.s32.totalorder %s5079_s18, 3  ;;  %s5081_s27 = smov [#allocation3]  }
  0x18   : > { %s6146_s24 = scalar_select %p5233_p8, 1, 0 }
  0x19   : > { %s5239_s25 = scalar_select %p96_p6, %s5067_s15, %s98_s21  }
  0x1a   : > { %6147 = sst [smem:[#allocation31_spill]] %s6146_s24  ;;  %p5241_p10 = pnand %p3723_p7, %p434_p9 }
  0x1b   : > { %6148 = sst [smem:[#allocation32_spill]] %s5239_s25  ;;  %s449_s28 = sshll.u32 %s5081_s27, 4  ;;  %s450_s28 = int_to_ptr.vmem [resolvable:$true] %s449_s28 }
  0x1c   : > { %s6149_s26 = scalar_select %p5241_p10, 1, 0 }
  0x1d   : > { %p4220_p11 = pneg %p5241_p10  ;;  %s6153_s0 = sld [smem:[#allocation35_spill]] }
  0x1e   : > { %6150 = sst [smem:[#allocation33_spill]] %s6149_s26 }
  0x1f   : > { %p5249_p12 = pnand %p4220_p11, %p6107_p5 }
  0x21   : > { %s6151_s29 = scalar_select %p5249_p12, 1, 0 }
  0x22   : > { %p6115_p1 = pneg %p5249_p12 }
  0x23   : > { %6152 = sst [smem:[#allocation34_spill]] %s6151_s29  ;;  %s4575_s25 = scalar_lea.hbm %s6153_s0, 256 }
  0x24   : > { %p4576_p0 = scmp.ne.s32.totalorder %s6153_s0, %s4575_s25  ;;  %p4582_p6 = scmp.lt.u32.totalorder %s4575_s25, %s6153_s0 }
  0x26   : > { %p4578_p2 = pnand %p6115_p1, %p4576_p0 }
  0x28   : > { %p4579_p4 = pneg %p4578_p2 }
  0x2a   : > { %p4584_p7 = pnand %p4582_p6, %p4579_p4 }
  0x2c   : > { %4587 = shalt.err (!%p4584_p7)
}
  0x2d   : > { %s4588_s21 = scalar_lea.vmem %s450_s28, 256  ;;  %p4596_p13 = scmp.lt.s32.totalorder %s450_s28, %s450_s28 }
  0x2e   : > { %p4589_p9 = scmp.ne.s32.totalorder %s450_s28, %s4588_s21  ;;  %p4597_p8 = scmp.lt.s32.totalorder %s4588_s21, %s4588_s21 }
  0x30   : > { %p4591_p11 = pnand %p4589_p9, %p6115_p1  ;;  %p4598_p10 = por %p4597_p8, %p4596_p13 }
  0x32   : > { %p4592_p5 = pneg %p4591_p11 }
  0x34   : > { %p4599_p3 = pnand %p4598_p10, %p4592_p5 }
  0x36   : > { %4602 = shalt.err (!%p4599_p3)
}
  0x37   : > { %s5082_s14 = smov 128   ;;  %s5083_s16 = smov 8  }
  0x38   : > { %4223 = dma.hbm_to_vmem [thread:$0]  (!%p5249_p12), %s6153_s0, 256, %s450_s28, [#allocation4], %s5082_s14, %s5082_s14, %s5083_s16  }
  0x39   : > { %s5278_s25 = sand.u32 1, %s5067_s15   ;;  %p6154_p0 = scmp.ne.s32.totalorder %s6145_s22, 0 }
  0x3a   : > { %p6155_p2 = scmp.lt.s32.totalorder %s5079_s18, 2  ;;  %s4178_s23 = smul.u32 768, %s5278_s25 }
  0x3b   : > { %s4179_s27 = smul.u32 12288, %s5075_s17  ;;  %s6157_s2 = sld [smem:[#allocation37_spill]] }
  0x3c   : > { %p5284_p3 = pnand %p6155_p2, %p6154_p0  ;;  %s483_s22 = scalar_lea.vmem [#allocation8], %s4178_s23 }
  0x3d   : > { %s490_s28 = sshll.u32 %s483_s22, 4  ;;  %s4180_s14 = smul.u32 12, %s5278_s25  ;;  %s5295_s28 = int_to_ptr.vmem [resolvable:$true] %s490_s28 }
  0x3e   : > { %s6156_s21 = scalar_select %p5284_p3, 1, 0 }
  0x3f   : > { %s6158_s16 = sand.u32 1, %s5079_s18   ;;  %p5306_p8 = pneg %p5284_p3 }
  0x40   : > { %s5300_s20 = scalar_lea.sflag [#allocation4], %s6158_s16 }
  0x41   : > { %s5293_s26 = scalar_lea.hbm %s6157_s2, %s4179_s27  ;;  %s4608_s23 = scalar_lea.hbm %s6157_s2, 24576 }
  0x42   : > { %s4603_s24 = scalar_lea.hbm %s5293_s26, 12288  ;;  %p4609_p4 = scmp.lt.u32.totalorder %s5293_s26, %s6157_s2 }
  0x43   : > { %p4604_p5 = scmp.ne.s32.totalorder %s5293_s26, %s4603_s24  ;;  %p4610_p6 = scmp.lt.u32.totalorder %s4608_s23, %s4603_s24 }
  0x44   : > { %s6159_s0 = scalar_select %p5306_p8, 1, 0 }
  0x45   : > { %p4606_p10 = pnand %p5306_p8, %p4604_p5  ;;  %p4611_p7 = por %p4610_p6, %p4609_p4 }
  0x46   : > { %p4612_p9 = scmp.lt.u32.totalorder %s4603_s24, %s5293_s26 }
  0x47   : > { %p4607_p13 = pneg %p4606_p10 }
  0x48   : > { %p4613_p11 = por %p4612_p9, %p4611_p7 }
  0x4a   : > { %p4614_p0 = pnand %p4613_p11, %p4607_p13 }
  0x4c   : > { %4617 = shalt.err (!%p4614_p0)
}
  0x4d   : > { %s4618_s16 = scalar_lea.vmem %s5295_s28, 12288  ;;  %s5084_s30 = smov [#allocation8]  }
  0x4e   : > { %p4619_p2 = scmp.ne.s32.totalorder %s5295_s28, %s4618_s16  ;;  %s4623_s19 = sshll.u32 %s5084_s30, 4  ;;  %s4624_s19 = int_to_ptr.vmem [resolvable:$false] %s4623_s19 }
  0x4f   : > { %s4625_s27 = scalar_lea.vmem %s4624_s19, 24576  ;;  %p4626_p1 = scmp.lt.s32.totalorder %s5295_s28, %s4624_s19 }
  0x50   : > { %p4621_p5 = pnand %p4619_p2, %p5306_p8  ;;  %p4627_p12 = scmp.lt.s32.totalorder %s4625_s27, %s4618_s16 }
  0x52   : > { %p4622_p10 = pneg %p4621_p5  ;;  %p4628_p4 = por %p4627_p12, %p4626_p1 }
  0x54   : > { %p4629_p6 = pnand %p4628_p4, %p4622_p10 }
  0x56   : > { %4632 = shalt.err (!%p4629_p6)
}
  0x57   : > { %s5085_s24 = smov 768   ;;  %s5086_s23 = smov 48  }
  0x58   : > { %4230 = dma.hbm_to_vmem [thread:$0]  (!%p5284_p3), %s5293_s26, 12288, %s5295_s28, %s5300_s20, %s5085_s24, %s5085_s24, %s5086_s23  }
  0x59   : > { %s4181_s22 = smul.u32 192, %s5075_s17  ;;  %s504_s30 = scalar_lea.vmem [#allocation9], %s4180_s14 }
  0x5a   : > { %s512_s19 = sshll.u32 %s504_s30, 4  ;;  %s3729_s16 = sshll.u32 %s5278_s25, 8  ;;  %s513_s19 = int_to_ptr.vmem [resolvable:$true] %s512_s19 }
  0x5b   : > { %s6160_s3 = sld [smem:[#allocation38_spill]] }
  0x61   : > { %s510_s15 = scalar_lea.hbm %s6160_s3, %s4181_s22  ;;  %s4638_s29 = scalar_lea.hbm %s6160_s3, 384 }
  0x62   : > { %s4633_s18 = scalar_lea.hbm %s510_s15, 192  ;;  %p4639_p7 = scmp.lt.u32.totalorder %s510_s15, %s6160_s3 }
  0x63   : > { %p4634_p12 = scmp.ne.s32.totalorder %s510_s15, %s4633_s18  ;;  %p4640_p9 = scmp.lt.u32.totalorder %s4638_s29, %s4633_s18 }
  0x64   : > { %p4642_p0 = scmp.lt.u32.totalorder %s4633_s18, %s510_s15 }
  0x65   : > { %p4636_p1 = pnand %p4634_p12, %p5306_p8  ;;  %p4641_p11 = por %p4640_p9, %p4639_p7 }
  0x67   : > { %p4637_p13 = pneg %p4636_p1  ;;  %p4643_p2 = por %p4642_p0, %p4641_p11 }
  0x69   : > { %p4644_p5 = pnand %p4643_p2, %p4637_p13 }
  0x6b   : > { %4647 = shalt.err (!%p4644_p5)
}
  0x6c   : > { %s4648_s2 = scalar_lea.vmem %s513_s19, 192  ;;  %s5087_s14 = smov [#allocation9]  }
  0x6d   : > { %p4649_p10 = scmp.ne.s32.totalorder %s513_s19, %s4648_s2  ;;  %s4653_s24 = sshll.u32 %s5087_s14, 4  ;;  %s4654_s24 = int_to_ptr.vmem [resolvable:$false] %s4653_s24 }
  0x6e   : > { %s4655_s1 = scalar_lea.vmem %s4654_s24, 384  ;;  %p4656_p12 = scmp.lt.s32.totalorder %s513_s19, %s4654_s24 }
  0x6f   : > { %p4651_p4 = pnand %p4649_p10, %p5306_p8  ;;  %p4657_p1 = scmp.lt.s32.totalorder %s4655_s1, %s4648_s2 }
  0x71   : > { %p4652_p6 = pneg %p4651_p4  ;;  %p4658_p3 = por %p4657_p1, %p4656_p12 }
  0x73   : > { %p4659_p7 = pnand %p4658_p3, %p4652_p6 }
  0x75   : > { %4662 = shalt.err (!%p4659_p7)
}
  0x76   : > { %p6161_p9 = scmp.ne.s32.totalorder %s6156_s21, 0  ;;  %s3933_s13 = sshll.u32 %s5075_s17, 12 }
  0x77   : > { %s5354_s23 = scalar_lea.hbm %s6092_s4, %s3933_s13  ;;  %s523_s22 = scalar_lea.vmem [#allocation10], %s3729_s16 }
  0x78   : > { %4233 = dma.hbm_to_vmem [thread:$0]  (!%p6161_p9), %s510_s15, 192, %s513_s19, %s5300_s20  }
  0x79   : > { %s530_s30 = sshll.u32 %s523_s22, 4  ;;  %s4663_s27 = scalar_lea.hbm %s5354_s23, 4096  ;;  %s5358_s30 = int_to_ptr.vmem [resolvable:$true] %s530_s30 }
  0x7a   : > { %p4664_p3 = scmp.ne.s32.totalorder %s5354_s23, %s4663_s27  ;;  %s4668_s26 = scalar_lea.hbm %s6092_s4, 8192 }
  0x7b   : > { %p4669_p0 = scmp.lt.u32.totalorder %s5354_s23, %s6092_s4  ;;  %p4670_p2 = scmp.lt.u32.totalorder %s4668_s26, %s4663_s27 }
  0x7c   : > { %p4666_p13 = pnand %p4664_p3, %p5306_p8  ;;  %p4672_p10 = scmp.lt.u32.totalorder %s4663_s27, %s5354_s23 }
  0x7d   : > { %p4671_p5 = por %p4670_p2, %p4669_p0 }
  0x7e   : > { %p4667_p11 = pneg %p4666_p13 }
  0x7f   : > { %p4673_p4 = por %p4672_p10, %p4671_p5 }
  0x81   : > { %p4674_p6 = pnand %p4673_p4, %p4667_p11 }
  0x83   : > { %4677 = shalt.err (!%p4674_p6)
}
  0x84   : > { %s4678_s16 = scalar_lea.vmem %s5358_s30, 4096  ;;  %s5088_s14 = smov [#allocation10]  }
  0x85   : > { %p4679_p12 = scmp.ne.s32.totalorder %s5358_s30, %s4678_s16  ;;  %s4683_s24 = sshll.u32 %s5088_s14, 4  ;;  %s4684_s24 = int_to_ptr.vmem [resolvable:$false] %s4683_s24 }
  0x86   : > { %s4685_s1 = scalar_lea.vmem %s4684_s24, 8192  ;;  %p4686_p3 = scmp.lt.s32.totalorder %s5358_s30, %s4684_s24 }
  0x87   : > { %p4681_p1 = pnand %p4679_p12, %p5306_p8  ;;  %p4687_p13 = scmp.lt.s32.totalorder %s4685_s1, %s4678_s16 }
  0x89   : > { %p4682_p7 = pneg %p4681_p1  ;;  %p4688_p0 = por %p4687_p13, %p4686_p3 }
  0x8b   : > { %p4689_p2 = pnand %p4688_p0, %p4682_p7 }
  0x8d   : > { %4692 = shalt.err (!%p4689_p2)
}
  0x8e   : > { %s6127_s13 = smov 64   ;;  %s5090_s18 = smov 4  }
  0x8f   : > { %4236 = dma.hbm_to_vmem [thread:$0]  (!%p6161_p9), %s5354_s23, 4096, %s5358_s30, %s5300_s20, %s6127_s13, %s6127_s13, %s5090_s18  }
  0x90   : > { %s5386_s29 = sshll.u32 %s5075_s17, 4  ;;  %s543_s22 = scalar_lea.vmem [#allocation11], %s5278_s25 }
  0x91   : > { %s550_s27 = sshll.u32 %s543_s22, 4  ;;  %s548_s26 = scalar_lea.hbm %s6093_s5, %s5386_s29  ;;  %s551_s27 = int_to_ptr.vmem [resolvable:$true] %s550_s27 }
  0x92   : > { %s4693_s28 = scalar_lea.hbm %s548_s26, 16  ;;  %s4698_s14 = scalar_lea.hbm %s6093_s5, 32 }
  0x93   : > { %p4694_p11 = scmp.ne.s32.totalorder %s548_s26, %s4693_s28  ;;  %p4699_p4 = scmp.lt.u32.totalorder %s548_s26, %s6093_s5 }
  0x94   : > { %p4700_p6 = scmp.lt.u32.totalorder %s4698_s14, %s4693_s28  ;;  %p4702_p1 = scmp.lt.u32.totalorder %s4693_s28, %s548_s26 }
  0x95   : > { %p4696_p5 = pnand %p4694_p11, %p5306_p8 }
  0x96   : > { %p4701_p12 = por %p4700_p6, %p4699_p4 }
  0x97   : > { %p4697_p10 = pneg %p4696_p5 }
  0x98   : > { %p4703_p7 = por %p4702_p1, %p4701_p12 }
  0x9a   : > { %p4704_p3 = pnand %p4703_p7, %p4697_p10 }
  0x9c   : > { %4707 = shalt.err (!%p4704_p3)
}
  0x9d   : > { %s4708_s24 = scalar_lea.vmem %s551_s27, 16  ;;  %s5091_s1 = smov [#allocation11]  }
  0x9e   : > { %p4709_p13 = scmp.ne.s32.totalorder %s551_s27, %s4708_s24  ;;  %s4713_s22 = sshll.u32 %s5091_s1, 4  ;;  %s4714_s22 = int_to_ptr.vmem [resolvable:$false] %s4713_s22 }
  0x9f   : > { %s4715_s15 = scalar_lea.vmem %s4714_s22, 32  ;;  %p4716_p11 = scmp.lt.s32.totalorder %s551_s27, %s4714_s22 }
  0xa0   : > { %p4711_p0 = pnand %p4709_p13, %p5306_p8  ;;  %p4717_p5 = scmp.lt.s32.totalorder %s4715_s15, %s4708_s24 }
  0xa2   : > { %p4712_p2 = pneg %p4711_p0  ;;  %p4718_p9 = por %p4717_p5, %p4716_p11 }
  0xa4   : > { %p4719_p4 = pnand %p4718_p9, %p4712_p2 }
  0xa6   : > { %4722 = shalt.err (!%p4719_p4)
}
  0xa7   : > { %p6162_p6 = scmp.ne.s32.totalorder %s6156_s21, 0  ;;  %s5410_s2 = scalar_lea.hbm %s6094_s6, %s5386_s29 }
  0xa8   : > { %s560_s16 = scalar_lea.vmem [#allocation12], %s5278_s25  ;;  %s5417_s24 = scalar_lea.hbm %s6095_s7, %s5386_s29 }
  0xa9   : > { %4239 = dma.hbm_to_vmem [thread:$0]  (!%p6162_p6), %s548_s26, 16, %s551_s27, %s5300_s20  }
  0xaa   : > { %s567_s14 = sshll.u32 %s560_s16, 4  ;;  %s4723_s1 = scalar_lea.hbm %s5410_s2, 16  ;;  %s568_s14 = int_to_ptr.vmem [resolvable:$true] %s567_s14 }
  0xab   : > { %p4724_p9 = scmp.ne.s32.totalorder %s5410_s2, %s4723_s1  ;;  %s4728_s22 = scalar_lea.hbm %s6094_s6, 32 }
  0xac   : > { %p4729_p1 = scmp.lt.u32.totalorder %s5410_s2, %s6094_s6  ;;  %p4730_p7 = scmp.lt.u32.totalorder %s4728_s22, %s4723_s1 }
  0xad   : > { %p4726_p10 = pnand %p4724_p9, %p5306_p8  ;;  %p4732_p13 = scmp.lt.u32.totalorder %s4723_s1, %s5410_s2 }
  0xae   : > { %p4731_p3 = por %p4730_p7, %p4729_p1 }
  0xaf   : > { %p4727_p12 = pneg %p4726_p10 }
  0xb0   : > { %p4733_p0 = por %p4732_p13, %p4731_p3 }
  0xb2   : > { %p4734_p2 = pnand %p4733_p0, %p4727_p12 }
  0xb4   : > { %4737 = shalt.err (!%p4734_p2)
}
  0xb5   : > { %s4738_s28 = scalar_lea.vmem %s568_s14, 16  ;;  %s5092_s16 = smov [#allocation12]  }
  0xb6   : > { %p4739_p11 = scmp.ne.s32.totalorder %s568_s14, %s4738_s28  ;;  %s4743_s23 = sshll.u32 %s5092_s16, 4  ;;  %s4744_s23 = int_to_ptr.vmem [resolvable:$false] %s4743_s23 }
  0xb7   : > { %s4745_s30 = scalar_lea.vmem %s4744_s23, 32  ;;  %p4746_p9 = scmp.lt.s32.totalorder %s568_s14, %s4744_s23 }
  0xb8   : > { %p4741_p5 = pnand %p4739_p11, %p5306_p8  ;;  %p4747_p10 = scmp.lt.s32.totalorder %s4745_s30, %s4738_s28 }
  0xba   : > { %p4742_p4 = pneg %p4741_p5  ;;  %p4748_p6 = por %p4747_p10, %p4746_p9 }
  0xbc   : > { %p4749_p1 = pnand %p4748_p6, %p4742_p4 }
  0xbe   : > { %4752 = shalt.err (!%p4749_p1)
}
  0xbf   : > { %p6163_p7 = scmp.ne.s32.totalorder %s6156_s21, 0  ;;  %s577_s1 = scalar_lea.vmem [#allocation13], %s5278_s25 }
  0xc0   : > { %s584_s27 = sshll.u32 %s577_s1, 4  ;;  %s3735_s26 = sshll.u32 %s5278_s25, 6  ;;  %s585_s27 = int_to_ptr.vmem [resolvable:$true] %s584_s27 }
  0xc1   : > { %4242 = dma.hbm_to_vmem [thread:$0]  (!%p6163_p7), %s5410_s2, 16, %s568_s14, %s5300_s20  }
  0xc2   : > { %s4753_s22 = scalar_lea.hbm %s5417_s24, 16  ;;  %s4758_s28 = scalar_lea.hbm %s6095_s7, 32 }
  0xc3   : > { %p4754_p12 = scmp.ne.s32.totalorder %s5417_s24, %s4753_s22  ;;  %p4759_p13 = scmp.lt.u32.totalorder %s5417_s24, %s6095_s7 }
  0xc4   : > { %p4760_p0 = scmp.lt.u32.totalorder %s4758_s28, %s4753_s22  ;;  %p4762_p11 = scmp.lt.u32.totalorder %s4753_s22, %s5417_s24 }
  0xc5   : > { %p4756_p6 = pnand %p4754_p12, %p5306_p8 }
  0xc6   : > { %p4761_p2 = por %p4760_p0, %p4759_p13 }
  0xc7   : > { %p4757_p3 = pneg %p4756_p6 }
  0xc8   : > { %p4763_p5 = por %p4762_p11, %p4761_p2 }
  0xca   : > { %p4764_p4 = pnand %p4763_p5, %p4757_p3 }
  0xcc   : > { %4767 = shalt.err (!%p4764_p4)
}
  0xcd   : > { %s4768_s2 = scalar_lea.vmem %s585_s27, 16  ;;  %s5093_s14 = smov [#allocation13]  }
  0xce   : > { %p4769_p9 = scmp.ne.s32.totalorder %s585_s27, %s4768_s2  ;;  %s4773_s30 = sshll.u32 %s5093_s14, 4  ;;  %s4774_s30 = int_to_ptr.vmem [resolvable:$false] %s4773_s30 }
  0xcf   : > { %s4775_s1 = scalar_lea.vmem %s4774_s30, 32  ;;  %p4776_p12 = scmp.lt.s32.totalorder %s585_s27, %s4774_s30 }
  0xd0   : > { %p4771_p10 = pnand %p4769_p9, %p5306_p8  ;;  %p4777_p6 = scmp.lt.s32.totalorder %s4775_s1, %s4768_s2 }
  0xd2   : > { %p4772_p1 = pneg %p4771_p10  ;;  %p4778_p7 = por %p4777_p6, %p4776_p12 }
  0xd4   : > { %p4779_p0 = pnand %p4778_p7, %p4772_p1 }
  0xd6   : > { %4782 = shalt.err (!%p4779_p0)
}
  0xd7   : > { %p6164_p13 = scmp.ne.s32.totalorder %s6156_s21, 0  ;;  %s3934_s22 = sshll.u32 %s5075_s17, 10 }
  0xd8   : > { %s595_s15 = scalar_lea.vmem [#allocation14], %s3735_s26  ;;  %s5465_s23 = scalar_lea.hbm %s6096_s8, %s3934_s22 }
  0xd9   : > { %4245 = dma.hbm_to_vmem [thread:$0]  (!%p6164_p13), %s5417_s24, 16, %s585_s27, %s5300_s20  }
  0xda   : > { %s602_s19 = sshll.u32 %s595_s15, 4  ;;  %s4783_s2 = scalar_lea.hbm %s5465_s23, 1024  ;;  %s5467_s19 = int_to_ptr.vmem [resolvable:$true] %s602_s19 }
  0xdb   : > { %p4784_p7 = scmp.ne.s32.totalorder %s5465_s23, %s4783_s2  ;;  %s4788_s14 = scalar_lea.hbm %s6096_s8, 2048 }
  0xdc   : > { %p4789_p11 = scmp.lt.u32.totalorder %s5465_s23, %s6096_s8  ;;  %p4790_p5 = scmp.lt.u32.totalorder %s4788_s14, %s4783_s2 }
  0xdd   : > { %p4786_p3 = pnand %p4784_p7, %p5306_p8  ;;  %p4792_p9 = scmp.lt.u32.totalorder %s4783_s2, %s5465_s23 }
  0xde   : > { %p4791_p4 = por %p4790_p5, %p4789_p11 }
  0xdf   : > { %p4787_p2 = pneg %p4786_p3 }
  0xe0   : > { %p4793_p10 = por %p4792_p9, %p4791_p4 }
  0xe2   : > { %p4794_p1 = pnand %p4793_p10, %p4787_p2 }
  0xe4   : > { %4797 = shalt.err (!%p4794_p1)
}
  0xe5   : > { %s4798_s15 = scalar_lea.vmem %s5467_s19, 1024  ;;  %s5094_s28 = smov [#allocation14]  }
  0xe6   : > { %p4799_p12 = scmp.ne.s32.totalorder %s5467_s19, %s4798_s15  ;;  %s4803_s16 = sshll.u32 %s5094_s28, 4  ;;  %s4804_s16 = int_to_ptr.vmem [resolvable:$false] %s4803_s16 }
  0xe7   : > { %s4805_s24 = scalar_lea.vmem %s4804_s16, 2048  ;;  %p4806_p7 = scmp.lt.s32.totalorder %s5467_s19, %s4804_s16 }
  0xe8   : > { %p4801_p6 = pnand %p4799_p12, %p5306_p8  ;;  %p4807_p3 = scmp.lt.s32.totalorder %s4805_s24, %s4798_s15 }
  0xea   : > { %p4802_p0 = pneg %p4801_p6  ;;  %p4808_p11 = por %p4807_p3, %p4806_p7 }
  0xec   : > { %p4809_p5 = pnand %p4808_p11, %p4802_p0 }
  0xee   : > { %4812 = shalt.err (!%p4809_p5)
}
  0xef   : > { %4248 = dma.hbm_to_vmem [thread:$0]  (!%p6164_p13), %s5465_s23, 1024, %s5467_s19, %s5300_s20, %s6127_s13, %s6127_s13, %s5090_s18  }
  0xf0   : > { %s5498_s14 = scalar_lea.hbm %s6097_s9, %s5386_s29  ;;  %s615_s30 = scalar_lea.vmem [#allocation15], %s5278_s25 }
  0xf1   : > { %s622_s1 = sshll.u32 %s615_s30, 4  ;;  %s5506_s16 = scalar_lea.hbm %s6098_s10, %s3934_s22  ;;  %s623_s1 = int_to_ptr.vmem [resolvable:$true] %s622_s1 }
  0xf2   : > { %s4813_s24 = scalar_lea.hbm %s5498_s14, 16  ;;  %s4818_s2 = scalar_lea.hbm %s6097_s9, 32 }
  0xf3   : > { %p4814_p2 = scmp.ne.s32.totalorder %s5498_s14, %s4813_s24  ;;  %p4819_p10 = scmp.lt.u32.totalorder %s5498_s14, %s6097_s9 }
  0xf4   : > { %p4820_p1 = scmp.lt.u32.totalorder %s4818_s2, %s4813_s24  ;;  %p4822_p6 = scmp.lt.u32.totalorder %s4813_s24, %s5498_s14 }
  0xf5   : > { %p4816_p4 = pnand %p4814_p2, %p5306_p8 }
  0xf6   : > { %p4821_p12 = por %p4820_p1, %p4819_p10 }
  0xf7   : > { %p4817_p9 = pneg %p4816_p4 }
  0xf8   : > { %p4823_p0 = por %p4822_p6, %p4821_p12 }
  0xfa   : > { %p4824_p7 = pnand %p4823_p0, %p4817_p9 }
  0xfc   : > { %4827 = shalt.err (!%p4824_p7)
}
  0xfd   : > { %s4828_s22 = scalar_lea.vmem %s623_s1, 16  ;;  %s5095_s30 = smov [#allocation15]  }
  0xfe   : > { %p4829_p3 = scmp.ne.s32.totalorder %s623_s1, %s4828_s22  ;;  %s4833_s15 = sshll.u32 %s5095_s30, 4  ;;  %s4834_s15 = int_to_ptr.vmem [resolvable:$false] %s4833_s15 }
  0xff   : > { %s4835_s28 = scalar_lea.vmem %s4834_s15, 32  ;;  %p4836_p2 = scmp.lt.s32.totalorder %s623_s1, %s4834_s15 }
 0x100   : > { %p4831_p11 = pnand %p4829_p3, %p5306_p8  ;;  %p4837_p4 = scmp.lt.s32.totalorder %s4835_s28, %s4828_s22 }
 0x102   : > { %p4832_p5 = pneg %p4831_p11  ;;  %p4838_p13 = por %p4837_p4, %p4836_p2 }
 0x104   : > { %p4839_p1 = pnand %p4838_p13, %p4832_p5 }
 0x106   : > { %4842 = shalt.err (!%p4839_p1)
}
 0x107   : > { %p6165_p10 = scmp.ne.s32.totalorder %s6156_s21, 0  ;;  %s633_s13 = scalar_lea.vmem [#allocation16], %s3735_s26 }
 0x108   : > { %s640_s24 = sshll.u32 %s633_s13, 4  ;;  %s5534_s2 = scalar_lea.hbm %s6099_s11, %s5386_s29  ;;  %s5528_s24 = int_to_ptr.vmem [resolvable:$true] %s640_s24 }
 0x109   : > { %4251 = dma.hbm_to_vmem [thread:$0]  (!%p6165_p10), %s5498_s14, 16, %s623_s1, %s5300_s20  }
 0x10a   : > { %s4843_s27 = scalar_lea.hbm %s5506_s16, 1024  ;;  %s4848_s15 = scalar_lea.hbm %s6098_s10, 2048 }
 0x10b   : > { %p4844_p13 = scmp.ne.s32.totalorder %s5506_s16, %s4843_s27  ;;  %p4849_p6 = scmp.lt.u32.totalorder %s5506_s16, %s6098_s10 }
 0x10c   : > { %p4850_p0 = scmp.lt.u32.totalorder %s4848_s15, %s4843_s27  ;;  %p4852_p3 = scmp.lt.u32.totalorder %s4843_s27, %s5506_s16 }
 0x10d   : > { %p4846_p9 = pnand %p4844_p13, %p5306_p8 }
 0x10e   : > { %p4851_p7 = por %p4850_p0, %p4849_p6 }
 0x10f   : > { %p4847_p12 = pneg %p4846_p9 }
 0x110   : > { %p4853_p11 = por %p4852_p3, %p4851_p7 }
 0x112   : > { %p4854_p5 = pnand %p4853_p11, %p4847_p12 }
 0x114   : > { %4857 = shalt.err (!%p4854_p5)
}
 0x115   : > { %s4858_s26 = scalar_lea.vmem %s5528_s24, 1024  ;;  %s5096_s28 = smov [#allocation16]  }
 0x116   : > { %p4859_p2 = scmp.ne.s32.totalorder %s5528_s24, %s4858_s26  ;;  %s4863_s13 = sshll.u32 %s5096_s28, 4  ;;  %s4864_s13 = int_to_ptr.vmem [resolvable:$false] %s4863_s13 }
 0x117   : > { %s4865_s19 = scalar_lea.vmem %s4864_s13, 2048  ;;  %p4866_p13 = scmp.lt.s32.totalorder %s5528_s24, %s4864_s13 }
 0x118   : > { %p4861_p4 = pnand %p4859_p2, %p5306_p8  ;;  %p4867_p9 = scmp.lt.s32.totalorder %s4865_s19, %s4858_s26 }
 0x11a   : > { %p4862_p1 = pneg %p4861_p4  ;;  %p4868_p6 = por %p4867_p9, %p4866_p13 }
 0x11c   : > { %p4869_p0 = pnand %p4868_p6, %p4862_p1 }
 0x11e   : > { %4872 = shalt.err (!%p4869_p0)
}
 0x11f   : > { %s6166_s23 = smov 64   ;;  %s653_s27 = scalar_lea.vmem [#allocation17], %s5278_s25 }
 0x120   : > { %4254 = dma.hbm_to_vmem [thread:$0]  (!%p6165_p10), %s5506_s16, 1024, %s5528_s24, %s5300_s20, %s6166_s23, %s6166_s23, %s5090_s18  }
 0x121   : > { %s660_s22 = sshll.u32 %s653_s27, 4  ;;  %s5566_s14 = scalar_lea.hbm %s6100_s12, %s5386_s29  ;;  %s661_s22 = int_to_ptr.vmem [resolvable:$true] %s660_s22 }
 0x122   : > { %s4873_s1 = scalar_lea.hbm %s5534_s2, 16  ;;  %s4878_s13 = scalar_lea.hbm %s6099_s11, 32 }
 0x123   : > { %p4874_p12 = scmp.ne.s32.totalorder %s5534_s2, %s4873_s1  ;;  %p4879_p11 = scmp.lt.u32.totalorder %s5534_s2, %s6099_s11 }
 0x124   : > { %p4880_p5 = scmp.lt.u32.totalorder %s4878_s13, %s4873_s1  ;;  %p4882_p4 = scmp.lt.u32.totalorder %s4873_s1, %s5534_s2 }
 0x125   : > { %p4876_p7 = pnand %p4874_p12, %p5306_p8 }
 0x126   : > { %p4881_p2 = por %p4880_p5, %p4879_p11 }
 0x127   : > { %p4877_p3 = pneg %p4876_p7 }
 0x128   : > { %p4883_p1 = por %p4882_p4, %p4881_p2 }
 0x12a   : > { %p4884_p13 = pnand %p4883_p1, %p4877_p3 }
 0x12c   : > { %4887 = shalt.err (!%p4884_p13)
}
 0x12d   : > { %s4888_s18 = scalar_lea.vmem %s661_s22, 16  ;;  %s5097_s16 = smov [#allocation17]  }
 0x12e   : > { %p4889_p9 = scmp.ne.s32.totalorder %s661_s22, %s4888_s18  ;;  %s4893_s24 = sshll.u32 %s5097_s16, 4  ;;  %s4894_s24 = int_to_ptr.vmem [resolvable:$false] %s4893_s24 }
 0x12f   : > { %s4895_s23 = scalar_lea.vmem %s4894_s24, 32  ;;  %p4896_p12 = scmp.lt.s32.totalorder %s661_s22, %s4894_s24 }
 0x130   : > { %p4891_p6 = pnand %p4889_p9, %p5306_p8  ;;  %p4897_p7 = scmp.lt.s32.totalorder %s4895_s23, %s4888_s18 }
 0x132   : > { %p4892_p0 = pneg %p4891_p6  ;;  %p4898_p10 = por %p4897_p7, %p4896_p12 }
 0x134   : > { %p4899_p5 = pnand %p4898_p10, %p4892_p0 }
 0x136   : > { %4902 = shalt.err (!%p4899_p5)
}
 0x137   : > { %p6167_p11 = scmp.ne.s32.totalorder %s6156_s21, 0  ;;  %s670_s3 = scalar_lea.vmem [#allocation18], %s5278_s25 }
 0x138   : > { %s677_s27 = sshll.u32 %s670_s3, 4  ;;  %s5098_s30 = smov [#allocation6]   ;;  %s5587_s27 = int_to_ptr.vmem [resolvable:$true] %s677_s27 }
 0x139   : > { %4257 = dma.hbm_to_vmem [thread:$0]  (!%p6167_p11), %s5534_s2, 16, %s661_s22, %s5300_s20  }
 0x13a   : > { %s465_s15 = sshll.u32 %s5098_s30, 4  ;;  %s4903_s1 = scalar_lea.hbm %s5566_s14, 16  ;;  %s466_s15 = int_to_ptr.vmem [resolvable:$true] %s465_s15 }
 0x13b   : > { %p4904_p10 = scmp.ne.s32.totalorder %s5566_s14, %s4903_s1  ;;  %s4908_s13 = scalar_lea.hbm %s6100_s12, 32 }
 0x13c   : > { %p4909_p4 = scmp.lt.u32.totalorder %s5566_s14, %s6100_s12  ;;  %p4910_p1 = scmp.lt.u32.totalorder %s4908_s13, %s4903_s1 }
 0x13d   : > { %p4906_p3 = pnand %p4904_p10, %p5306_p8  ;;  %p4912_p9 = scmp.lt.u32.totalorder %s4903_s1, %s5566_s14 }
 0x13e   : > { %p4911_p13 = por %p4910_p1, %p4909_p4 }
 0x13f   : > { %p4907_p2 = pneg %p4906_p3 }
 0x140   : > { %p4913_p6 = por %p4912_p9, %p4911_p13 }
 0x142   : > { %p4914_p0 = pnand %p4913_p6, %p4907_p2 }
 0x144   : > { %4917 = shalt.err (!%p4914_p0)
}
 0x145   : > { %s4918_s2 = scalar_lea.vmem %s5587_s27, 16  ;;  %s5099_s22 = smov [#allocation18]  }
 0x146   : > { %p4919_p12 = scmp.ne.s32.totalorder %s5587_s27, %s4918_s2  ;;  %s4923_s16 = sshll.u32 %s5099_s22, 4  ;;  %s4924_s16 = int_to_ptr.vmem [resolvable:$false] %s4923_s16 }
 0x147   : > { %s4925_s24 = scalar_lea.vmem %s4924_s16, 32  ;;  %p4926_p10 = scmp.lt.s32.totalorder %s5587_s27, %s4924_s16 }
 0x148   : > { %p4921_p7 = pnand %p4919_p12, %p5306_p8  ;;  %p4927_p3 = scmp.lt.s32.totalorder %s4925_s24, %s4918_s2 }
 0x14a   : > { %p4922_p5 = pneg %p4921_p7  ;;  %p4928_p4 = por %p4927_p3, %p4926_p10 }
 0x14c   : > { %p4929_p1 = pnand %p4928_p4, %p4922_p5 }
 0x14e   : > { %4932 = shalt.err (!%p4929_p1)
}
 0x14f   : > { %s6168_s23 = sld [smem:[#allocation34_spill]]  ;;  %s6169_s1 = sld [smem:[#allocation36_spill]] }
 0x150   : > { %4260 = dma.hbm_to_vmem [thread:$0]  (!%p6167_p11), %s5566_s14, 16, %s5587_s27, %s5300_s20  }
 0x155   : > { %s4933_s26 = scalar_lea.hbm %s6169_s1, 32  ;;  %p6170_p13 = scmp.ne.s32.totalorder %s6168_s23, 0 }
 0x156   : > { %p4934_p2 = scmp.ne.s32.totalorder %s6169_s1, %s4933_s26  ;;  %p4940_p12 = scmp.lt.u32.totalorder %s4933_s26, %s6169_s1 }
 0x157   : > { %p6171_p9 = pneg %p6170_p13 }
 0x159   : > { %p4936_p6 = pnand %p4934_p2, %p6171_p9 }
 0x15b   : > { %p4937_p0 = pneg %p4936_p6 }
 0x15d   : > { %p4942_p7 = pnand %p4940_p12, %p4937_p0 }
 0x15f   : > { %4945 = shalt.err (!%p4942_p7)
}
 0x160   : > { %s4946_s14 = scalar_lea.vmem %s466_s15, 32  ;;  %p6172_p10 = pmov %p6171_p9 }
 0x161   : > { %p4947_p5 = scmp.ne.s32.totalorder %s466_s15, %s4946_s14  ;;  %p4954_p1 = scmp.lt.s32.totalorder %s466_s15, %s466_s15 }
 0x162   : > { %p4955_p11 = scmp.lt.s32.totalorder %s4946_s14, %s4946_s14 }
 0x163   : > { %p4949_p3 = pnand %p4947_p5, %p6172_p10 }
 0x164   : > { %p4956_p8 = por %p4955_p11, %p4954_p1 }
 0x165   : > { %p4950_p4 = pneg %p4949_p3 }
 0x167   : > { %p4957_p2 = pnand %p4956_p8, %p4950_p4 }
 0x169   : > { %4960 = shalt.err (!%p4957_p2)
}
 0x16a   : > { %s5100_s27 = smov 16   ;;  %s5101_s2 = smov 1  }
 0x16b   : > { %4226 = dma.hbm_to_vmem [thread:$0]  (!%p6170_p13), %s6169_s1, 32, %s466_s15, [#allocation7], %s5100_s27, %s5100_s27, %s5101_s2  }
 0x16c   : > { %s6173_s30 = sld [smem:[#allocation39_spill]]  ;;  %s687_s13 = scalar_lea.vmem [#allocation19], %s5278_s25 }
 0x16d   : > { %s694_s19 = sshll.u32 %s687_s13, 4  ;;  %p6175_p11 = scmp.ne.s32.totalorder %s6159_s0, 0  ;;  %s695_s19 = int_to_ptr.vmem [resolvable:$true] %s694_s19 }
 0x172   : > { %s6174_s26 = smov %s6173_s30  ;;  %s5635_s28 = scalar_lea.hbm %s6173_s30, %s5386_s29 }
 0x173   : > { %s4961_s18 = scalar_lea.hbm %s5635_s28, 16  ;;  %s4966_s15 = scalar_lea.hbm %s6174_s26, 32 }
 0x174   : > { %p4962_p8 = scmp.ne.s32.totalorder %s5635_s28, %s4961_s18  ;;  %p4967_p13 = scmp.lt.u32.totalorder %s5635_s28, %s6174_s26 }
 0x175   : > { %p4968_p0 = scmp.lt.u32.totalorder %s4966_s15, %s4961_s18  ;;  %p4970_p7 = scmp.lt.u32.totalorder %s4961_s18, %s5635_s28 }
 0x176   : > { %p4964_p9 = pnand %p4962_p8, %p6175_p11 }
 0x177   : > { %p4969_p12 = por %p4968_p0, %p4967_p13 }
 0x178   : > { %p4965_p6 = pneg %p4964_p9 }
 0x179   : > { %p4971_p5 = por %p4970_p7, %p4969_p12 }
 0x17b   : > { %p4972_p10 = pnand %p4971_p5, %p4965_p6 }
 0x17d   : > { %4975 = shalt.err (!%p4972_p10)
}
 0x17e   : > { %s4976_s25 = scalar_lea.vmem %s695_s19, 16  ;;  %s5102_s29 = smov [#allocation19]  }
 0x17f   : > { %p4977_p3 = scmp.ne.s32.totalorder %s695_s19, %s4976_s25  ;;  %s4981_s22 = sshll.u32 %s5102_s29, 4  ;;  %s4982_s22 = int_to_ptr.vmem [resolvable:$false] %s4981_s22 }
 0x180   : > { %s4983_s16 = scalar_lea.vmem %s4982_s22, 32  ;;  %p4984_p2 = scmp.lt.s32.totalorder %s695_s19, %s4982_s22 }
 0x181   : > { %p4979_p4 = pnand %p4977_p3, %p6175_p11  ;;  %p4985_p8 = scmp.lt.s32.totalorder %s4983_s16, %s4976_s25 }
 0x183   : > { %p4980_p1 = pneg %p4979_p4  ;;  %p4986_p9 = por %p4985_p8, %p4984_p2 }
 0x185   : > { %p4987_p0 = pnand %p4986_p9, %p4980_p1 }
 0x187   : > { %4990 = shalt.err (!%p4987_p0)
}
 0x188   : > { %p6176_p13 = scmp.ne.s32.totalorder %s6156_s21, 0  ;;  %s6177_s24 = sld [smem:[#allocation33_spill]] }
 0x18a   : > { %4263 = dma.hbm_to_vmem [thread:$0]  (!%p6176_p13), %s5635_s28, 16, %s695_s19, %s5300_s20  }
 0x18e   : > { %p6178_p6 = scmp.ne.s32.totalorder %s6177_s24, 0 }
 0x18f   : > { %s6179_s0 = sld [smem:[#allocation29_spill]] (!%p6178_p6) }
 0x190   : > { %703 = sbr.rel (%p6178_p6) target bundleno = 4138 (0x102a), region = 76 }
 0x195   : > { %p6180_p11 = scmp.eq.s32.totalorder (!%p6178_p6), %s6179_s0, 0 }
 0x197   : > { %5042 = dma.done.wait (%p6180_p11), [#allocation4], 256   ;;  %p6181_p12 = pmov %p6180_p11 }
 0x198   : > { %p6182_p7 = pmov %p6180_p11 }
 0x199   : > { %5044 = vsyncadd (%p6181_p12), [#allocation4], 4294967040 }
 0x19a   : > { %5046 = dma.done.wait (%p6182_p7), [#allocation7], 32   ;;  %p6183_p5 = pmov %p6182_p7 }
 0x19b   : > { %s6184_s21 = sld [smem:[#allocation25_spill]]  ;;  %s6185_s3 = sld [smem:[#allocation31_spill]] }
 0x19c   : > { %5048 = vsyncadd (%p6183_p5), [#allocation7], 4294967264  ;;  %s713_s30 = sand.u32 1, %s6179_s0  }
 0x19d   : > { %s714_s13 = scalar_lea.sflag [#allocation4], %s713_s30 }
 0x1a1   : > { %s5668_s20 = sand.u32 1, %s6184_s21   ;;  %p6186_p10 = scmp.ne.s32.totalorder %s6185_s3, 0 }
 0x1a2   : > { %s4182_s28 = smul.u32 768, %s5668_s20 }
 0x1a4   : > { %s5671_s19 = scalar_lea.vmem [#allocation8], %s4182_s28 }
 0x1a5   : > { %5050 = dma.done.wait (%p6186_p10), %s714_s13, 18736  }
 0x1a6   : > { %5052 = vsyncadd (%p6186_p10), %s714_s13, 4294948560  ;;  %s4183_s18 = smul.u32 12, %s5668_s20  ;;  %s3748_s23 = sshll.u32 %s5668_s20, 8 }
 0x1a7   : > { %s3749_s14 = sshll.u32 %s5668_s20, 6  ;;  %s5682_s27 = scalar_lea.vmem [#allocation10], %s3748_s23 }
 0x1a8   : > { %s5680_s15 = scalar_lea.vmem [#allocation9], %s4183_s18  ;;  %s743_s2 = scalar_lea.vmem [#allocation11], %s5668_s20 }
 0x1a9   : > { %s751_s25 = scalar_lea.vmem [#allocation12], %s5668_s20  ;;  %s759_s29 = scalar_lea.vmem [#allocation13], %s5668_s20 }
 0x1aa   : > { %s5687_s22 = scalar_lea.vmem [#allocation14], %s3749_s14  ;;  %s776_s16 = scalar_lea.vmem [#allocation15], %s5668_s20 }
 0x1ab   : > { %s5690_s24 = scalar_lea.vmem [#allocation16], %s3749_s14  ;;  %s793_s0 = scalar_lea.vmem [#allocation17], %s5668_s20 }
 0x1ac   : > { %s801_s21 = scalar_lea.vmem [#allocation18], %s5668_s20  ;;  %s809_s3 = scalar_lea.vmem [#allocation19], %s5668_s20 }
 0x1ad   : > { %s6187_s30 = sld [smem:[#allocation27_spill]] }
 0x1b3   : > { %p3751_p3 = scmp.ne.s32.totalorder %s6187_s30, 0 }
 0x1b4   : > { %v905_v0 = vld [vmem:[#allocation3] sm:$0xff] (!%p3751_p3)  ;;  %v906_v1 = vld [vmem:[#allocation3 + $0x8] sm:$0xff] (!%p3751_p3) }
 0x1b5   : > { %904 = sbr.rel (%p3751_p3) target bundleno = 444 (0x1bc), region = 136  ;;  %907 = vst [vmem:[#allocation20] sm:$0xff] (!%p3751_p3), %v905_v0  ;;  %908 = vst [vmem:[#allocation20 + $0x8] sm:$0xff] (!%p3751_p3), %v906_v1 }
 0x1bc PF: > { %v4335_v2 = vld [vmem:[%s5671_s19 + $0x4] ss:$48 sps:$4 sm:$0xff]   ;;  %v4337_v3 = vld [vmem:[%s5671_s19] ss:$48 sps:$4 sm:$0xff]   ;;  %v5103_v4 = vmov 0   ;;  %vm5105_vm0 = vmmov 0  }
 0x1bd   : > { %1158 = vmatprep.mubr.bf16.mxu0 %v5103_v4  ;;  %1201 = vmatprep.mubr.bf16.mxu1 %v5103_v4  ;;  %v4338_v5 = vld [vmem:[%s5671_s19 + $0x64] ss:$48 sps:$4 sm:$0xff]   ;;  %v4340_v6 = vld [vmem:[%s5671_s19 + $0x60] ss:$48 sps:$4 sm:$0xff]   ;;  %v4383_v17 = vld [vmem:[%s5671_s19 + $0xc] ss:$48 sps:$4 sm:$0xff]  }
 0x1be   : > { %1126 = vmatprep.subr.bf16.mxu0 %v4335_v2  ;;  %v4341_v7 = vld [vmem:[%s5671_s19 + $0xc4] ss:$48 sps:$4 sm:$0xff]   ;;  %v4343_v8 = vld [vmem:[%s5671_s19 + $0xc0] ss:$48 sps:$4 sm:$0xff]   ;;  %v4385_v18 = vld [vmem:[%s5671_s19 + $0x8] ss:$48 sps:$4 sm:$0xff]   ;;  %1169 = vmatprep.subr.bf16.mxu1 %v4383_v17 }
 0x1bf   : > { %1127 = vmatpush1.bf16.msra.mxu0 %v4337_v3  ;;  %v4344_v9 = vld [vmem:[%s5671_s19 + $0x124] ss:$48 sps:$4 sm:$0xff]   ;;  %v4346_v10 = vld [vmem:[%s5671_s19 + $0x120] ss:$48 sps:$4 sm:$0xff]   ;;  %v4386_v20 = vld [vmem:[%s5671_s19 + $0x6c] ss:$48 sps:$4 sm:$0xff]   ;;  %1170 = vmatpush1.bf16.msra.mxu1 %v4385_v18 }
 0x1c0   : > { %1128 = vmatprep.subr.bf16.mxu0 %v4338_v5  ;;  %v4347_v11 = vld [vmem:[%s5671_s19 + $0x184] ss:$48 sps:$4 sm:$0xff]   ;;  %v4349_v12 = vld [vmem:[%s5671_s19 + $0x180] ss:$48 sps:$4 sm:$0xff]   ;;  %v4388_v23 = vld [vmem:[%s5671_s19 + $0x68] ss:$48 sps:$4 sm:$0xff]   ;;  %1171 = vmatprep.subr.bf16.mxu1 %v4386_v20 }
 0x1c1   : > { %v4350_v13 = vld [vmem:[%s5671_s19 + $0x1e4] ss:$48 sps:$4 sm:$0xff]   ;;  %v4352_v14 = vld [vmem:[%s5671_s19 + $0x1e0] ss:$48 sps:$4 sm:$0xff]   ;;  %v4389_v24 = vld [vmem:[%s5671_s19 + $0xcc] ss:$48 sps:$4 sm:$0xff]  }
 0x1c2   : > { %v4353_v15 = vld [vmem:[%s5671_s19 + $0x244] ss:$48 sps:$4 sm:$0xff]   ;;  %v4355_v16 = vld [vmem:[%s5671_s19 + $0x240] ss:$48 sps:$4 sm:$0xff]   ;;  %v4391_v27 = vld [vmem:[%s5671_s19 + $0xc8] ss:$48 sps:$4 sm:$0xff]  }
 0x1c3   : > { %1129 = vmatpush1.bf16.msra.mxu0 %v4340_v6  ;;  %v4356_v19 = vld [vmem:[%s5671_s19 + $0x2a4] ss:$48 sps:$4 sm:$0xff]   ;;  %v4358_v21 = vld [vmem:[%s5671_s19 + $0x2a0] ss:$48 sps:$4 sm:$0xff]   ;;  %1172 = vmatpush1.bf16.msra.mxu1 %v4388_v23  ;;  %v4392_v29 = vld [vmem:[%s5671_s19 + $0x12c] ss:$48 sps:$4 sm:$0xff]  }
 0x1c4   : > { %1130 = vmatprep.subr.bf16.mxu0 %v4341_v7  ;;  %v909_v22 = vld [vmem:[#allocation20] sm:$0xff]  ;;  %v910_v25 = vld [vmem:[#allocation20 + $0x8] sm:$0xff]  ;;  %1173 = vmatprep.subr.bf16.mxu1 %v4389_v24  ;;  %vm2006_vm1 = vcmask 1043456   ;;  %vm1978_vm2 = vcmask 64512   ;;  %s6188_s28 = sld [smem:[#allocation29_spill]]  ;;  %s5106_s13 = smov [#allocation20]  }
 0x1c5   : > { %v4361_v26 = vld [vmem:[%s5671_s19 + $0x14] ss:$48 sps:$4 sm:$0xff]   ;;  %v5721_v28 = vpack.c.bf16 %v910_v25, %v909_v22  ;;  %v4359_v30 = vld [vmem:[%s5671_s19 + $0x10] ss:$48 sps:$4 sm:$0xff]   ;;  %v4394_v32 = vld [vmem:[%s5671_s19 + $0x128] ss:$48 sps:$4 sm:$0xff]  }
 0x1c6   : > { %v4364_v31 = vld [vmem:[%s5671_s19 + $0x74] ss:$48 sps:$4 sm:$0xff]   ;;  %v4395_v33 = vld [vmem:[%s5671_s19 + $0x18c] ss:$48 sps:$4 sm:$0xff]   ;;  %v4362_v34 = vld [vmem:[%s5671_s19 + $0x70] ss:$48 sps:$4 sm:$0xff]  }
 0x1c7   : > { %1131 = vmatpush1.bf16.msra.mxu0 %v4343_v8  ;;  %1174 = vmatpush1.bf16.msra.mxu1 %v4391_v27  ;;  %v4367_v35 = vld [vmem:[%s5671_s19 + $0xd4] ss:$48 sps:$4 sm:$0xff]   ;;  %v4397_v36 = vld [vmem:[%s5671_s19 + $0x188] ss:$48 sps:$4 sm:$0xff]   ;;  %v4398_v37 = vld [vmem:[%s5671_s19 + $0x1ec] ss:$48 sps:$4 sm:$0xff]  }
 0x1c8   : > { %1132 = vmatprep.subr.bf16.mxu0 %v4344_v9  ;;  %1175 = vmatprep.subr.bf16.mxu1 %v4392_v29  ;;  %v4365_v38 = vld [vmem:[%s5671_s19 + $0xd0] ss:$48 sps:$4 sm:$0xff]   ;;  %v4370_v39 = vld [vmem:[%s5671_s19 + $0x134] ss:$48 sps:$4 sm:$0xff]   ;;  %v4400_v41 = vld [vmem:[%s5671_s19 + $0x1e8] ss:$48 sps:$4 sm:$0xff]  }
 0x1c9   : > { %v4368_v40 = vld [vmem:[%s5671_s19 + $0x130] ss:$48 sps:$4 sm:$0xff]   ;;  %v4401_v42 = vld [vmem:[%s5671_s19 + $0x24c] ss:$48 sps:$4 sm:$0xff]   ;;  %v4373_v43 = vld [vmem:[%s5671_s19 + $0x194] ss:$48 sps:$4 sm:$0xff]  }
 0x1ca   : > { %v4403_v44 = vld [vmem:[%s5671_s19 + $0x248] ss:$48 sps:$4 sm:$0xff]   ;;  %v4404_v45 = vld [vmem:[%s5671_s19 + $0x2ac] ss:$48 sps:$4 sm:$0xff]   ;;  %v4371_v46 = vld [vmem:[%s5671_s19 + $0x190] ss:$48 sps:$4 sm:$0xff]  }
 0x1cb   : > { %1133 = vmatpush1.bf16.msra.mxu0 %v4346_v10  ;;  %1176 = vmatpush1.bf16.msra.mxu1 %v4394_v32  ;;  %v4376_v47 = vld [vmem:[%s5671_s19 + $0x1f4] ss:$48 sps:$4 sm:$0xff]   ;;  %v4406_v48 = vld [vmem:[%s5671_s19 + $0x2a8] ss:$48 sps:$4 sm:$0xff]   ;;  %v4409_v49 = vld [vmem:[%s5671_s19 + $0x1c] ss:$48 sps:$4 sm:$0xff]  }
 0x1cc   : > { %1134 = vmatprep.subr.bf16.mxu0 %v4347_v11  ;;  %1177 = vmatprep.subr.bf16.mxu1 %v4395_v33  ;;  %v4374_v50 = vld [vmem:[%s5671_s19 + $0x1f0] ss:$48 sps:$4 sm:$0xff]   ;;  %v4379_v51 = vld [vmem:[%s5671_s19 + $0x254] ss:$48 sps:$4 sm:$0xff]   ;;  %v4407_v52 = vld [vmem:[%s5671_s19 + $0x18] ss:$48 sps:$4 sm:$0xff]  }
 0x1cd   : > { %v4412_v53 = vld [vmem:[%s5671_s19 + $0x7c] ss:$48 sps:$4 sm:$0xff]   ;;  %v4377_v54 = vld [vmem:[%s5671_s19 + $0x250] ss:$48 sps:$4 sm:$0xff]   ;;  %v4382_v55 = vld [vmem:[%s5671_s19 + $0x2b4] ss:$48 sps:$4 sm:$0xff]  }
 0x1ce   : > { %v4410_v56 = vld [vmem:[%s5671_s19 + $0x78] ss:$48 sps:$4 sm:$0xff]   ;;  %v4415_v57 = vld [vmem:[%s5671_s19 + $0xdc] ss:$48 sps:$4 sm:$0xff]   ;;  %v4380_v58 = vld [vmem:[%s5671_s19 + $0x2b0] ss:$48 sps:$4 sm:$0xff]  }
 0x1cf   : > { %1135 = vmatpush1.bf16.msra.mxu0 %v4349_v12  ;;  %1178 = vmatpush1.bf16.msra.mxu1 %v4397_v36  ;;  %v4413_v59 = vld [vmem:[%s5671_s19 + $0xd8] ss:$48 sps:$4 sm:$0xff]   ;;  %v4418_v60 = vld [vmem:[%s5671_s19 + $0x13c] ss:$48 sps:$4 sm:$0xff]   ;;  %v4433_v7 = vld [vmem:[%s5671_s19 + $0x24] ss:$48 sps:$4 sm:$0xff]  }
 0x1d0   : > { %1136 = vmatprep.subr.bf16.mxu0 %v4350_v13  ;;  %1179 = vmatprep.subr.bf16.mxu1 %v4398_v37  ;;  %v4416_v61 = vld [vmem:[%s5671_s19 + $0x138] ss:$48 sps:$4 sm:$0xff]   ;;  %v4421_v62 = vld [vmem:[%s5671_s19 + $0x19c] ss:$48 sps:$4 sm:$0xff]   ;;  %v4431_v8 = vld [vmem:[%s5671_s19 + $0x20] ss:$48 sps:$4 sm:$0xff]  }
 0x1d1   : > { %v4419_v63 = vld [vmem:[%s5671_s19 + $0x198] ss:$48 sps:$4 sm:$0xff]   ;;  %v4424_v0 = vld [vmem:[%s5671_s19 + $0x1fc] ss:$48 sps:$4 sm:$0xff]   ;;  %v4439_v11 = vld [vmem:[%s5671_s19 + $0x84] ss:$48 sps:$4 sm:$0xff]  }
 0x1d2   : > { %v4422_v1 = vld [vmem:[%s5671_s19 + $0x1f8] ss:$48 sps:$4 sm:$0xff]   ;;  %v4427_v2 = vld [vmem:[%s5671_s19 + $0x25c] ss:$48 sps:$4 sm:$0xff]   ;;  %v4437_v12 = vld [vmem:[%s5671_s19 + $0x80] ss:$48 sps:$4 sm:$0xff]  }
 0x1d3   : > { %1137 = vmatpush1.bf16.msra.mxu0 %v4352_v14  ;;  %1180 = vmatpush1.bf16.msra.mxu1 %v4400_v41  ;;  %v4425_v3 = vld [vmem:[%s5671_s19 + $0x258] ss:$48 sps:$4 sm:$0xff]   ;;  %v4430_v5 = vld [vmem:[%s5671_s19 + $0x2bc] ss:$48 sps:$4 sm:$0xff]   ;;  %v4445_v14 = vld [vmem:[%s5671_s19 + $0xe4] ss:$48 sps:$4 sm:$0xff]  }
 0x1d4   : > { %1138 = vmatprep.subr.bf16.mxu0 %v4353_v15  ;;  %1181 = vmatprep.subr.bf16.mxu1 %v4401_v42  ;;  %v4428_v6 = vld [vmem:[%s5671_s19 + $0x2b8] ss:$48 sps:$4 sm:$0xff]   ;;  %v4436_v9 = vld [vmem:[%s5671_s19 + $0x2c] ss:$48 sps:$4 sm:$0xff]   ;;  %v4443_v15 = vld [vmem:[%s5671_s19 + $0xe0] ss:$48 sps:$4 sm:$0xff]  }
 0x1d5   : > { %v4434_v10 = vld [vmem:[%s5671_s19 + $0x28] ss:$48 sps:$4 sm:$0xff]   ;;  %v4448_v17 = vld [vmem:[%s5671_s19 + $0xec] ss:$48 sps:$4 sm:$0xff]   ;;  %v4449_v18 = vld [vmem:[%s5671_s19 + $0x140] ss:$48 sps:$4 sm:$0xff]  }
 0x1d6   : > { %v4440_v13 = vld [vmem:[%s5671_s19 + $0x88] ss:$48 sps:$4 sm:$0xff]   ;;  %v4454_v20 = vld [vmem:[%s5671_s19 + $0x14c] ss:$48 sps:$4 sm:$0xff]   ;;  %v4455_v24 = vld [vmem:[%s5671_s19 + $0x1a0] ss:$48 sps:$4 sm:$0xff]  }
 0x1d7   : > { %1139 = vmatpush1.bf16.msra.mxu0 %v4355_v16  ;;  %1182 = vmatpush1.bf16.msra.mxu1 %v4403_v44  ;;  %v4446_v16 = vld [vmem:[%s5671_s19 + $0xe8] ss:$48 sps:$4 sm:$0xff]   ;;  %v4460_v23 = vld [vmem:[%s5671_s19 + $0x1ac] ss:$48 sps:$4 sm:$0xff]   ;;  %v4463_v25 = vld [vmem:[%s5671_s19 + $0x204] ss:$48 sps:$4 sm:$0xff]  }
 0x1d8   : > { %1140 = vmatprep.subr.bf16.mxu0 %v4356_v19  ;;  %1183 = vmatprep.subr.bf16.mxu1 %v4404_v45  ;;  %v4451_v19 = vld [vmem:[%s5671_s19 + $0x144] ss:$48 sps:$4 sm:$0xff]   ;;  %v4452_v22 = vld [vmem:[%s5671_s19 + $0x148] ss:$48 sps:$4 sm:$0xff]   ;;  %v4466_v27 = vld [vmem:[%s5671_s19 + $0x20c] ss:$48 sps:$4 sm:$0xff]  }
 0x1d9   : > { %v4461_v29 = vld [vmem:[%s5671_s19 + $0x200] ss:$48 sps:$4 sm:$0xff]   ;;  %v4472_v32 = vld [vmem:[%s5671_s19 + $0x26c] ss:$48 sps:$4 sm:$0xff]   ;;  %p4269_p4 = scmp.eq.s32.totalorder %s6188_s28, 1 }
 0x1da   : > { %v4467_v33 = vld [vmem:[%s5671_s19 + $0x260] ss:$48 sps:$4 sm:$0xff]   ;;  %v4478_v36 = vld [vmem:[%s5671_s19 + $0x2cc] ss:$48 sps:$4 sm:$0xff]  }
 0x1db   : > { %1141 = vmatpush1.bf16.msra.mxu0 %v4358_v21  ;;  %1184 = vmatpush1.bf16.msra.mxu1 %v4406_v48  ;;  %v4457_v21 = vld [vmem:[%s5671_s19 + $0x1a4] ss:$48 sps:$4 sm:$0xff]   ;;  %v4473_v37 = vld [vmem:[%s5671_s19 + $0x2c0] ss:$48 sps:$4 sm:$0xff]  }
 0x1dc   : > { %1450 = vmatprep.subr.bf16.mxu0 %v4361_v26  ;;  %1493 = vmatprep.subr.bf16.mxu1 %v4409_v49  ;;  %v4458_v26 = vld [vmem:[%s5671_s19 + $0x1a8] ss:$48 sps:$4 sm:$0xff]  }
 0x1de   : > { %1159 = vmatmul.mubr.bf16.vlgmr.msra.gmra.mrb[0].mxu0 %v5721_v28  ;;  %1202 = vmatmul.mubr.bf16.vlgmr.msra.gmra.mrb[0].mxu1 %v5721_v28 }
 0x1df   : > { %1451 = vmatpush1.bf16.msra.mxu0 %v4359_v30  ;;  %1482 = vmatprep.mubr.bf16.mxu0 %v5103_v4  ;;  %v4469_v30 = vld [vmem:[%s5671_s19 + $0x264] ss:$48 sps:$4 sm:$0xff]  }
 0x1e0   : > { %1452 = vmatprep.subr.bf16.mxu0 %v4364_v31  ;;  %1494 = vmatpush1.bf16.msra.mxu1 %v4407_v52  ;;  %v4464_v31 = vld [vmem:[%s5671_s19 + $0x208] ss:$48 sps:$4 sm:$0xff]  }
 0x1e1   : > { %1525 = vmatprep.mubr.bf16.mxu1 %v5103_v4  ;;  %1495 = vmatprep.subr.bf16.mxu1 %v4412_v53 }
 0x1e3   : > { %1453 = vmatpush1.bf16.msra.mxu0 %v4362_v34  ;;  %v4475_v34 = vld [vmem:[%s5671_s19 + $0x2c4] ss:$48 sps:$4 sm:$0xff]  }
 0x1e4   : > { %1454 = vmatprep.subr.bf16.mxu0 %v4367_v35  ;;  %1496 = vmatpush1.bf16.msra.mxu1 %v4410_v56  ;;  %v4470_v35 = vld [vmem:[%s5671_s19 + $0x268] ss:$48 sps:$4 sm:$0xff]  }
 0x1e5   : > { %1497 = vmatprep.subr.bf16.mxu1 %v4415_v57 }
 0x1e7   : > { %1455 = vmatpush1.bf16.msra.mxu0 %v4365_v38  ;;  %v4476_v38 = vld [vmem:[%s5671_s19 + $0x2c8] ss:$48 sps:$4 sm:$0xff]  }
 0x1e8   : > { %1456 = vmatprep.subr.bf16.mxu0 %v4370_v39  ;;  %1498 = vmatpush1.bf16.msra.mxu1 %v4413_v59  ;;  %v5104_v39 = vmov 0.0  }
 0x1e9   : > { %1499 = vmatprep.subr.bf16.mxu1 %v4418_v60 }
 0x1eb   : > { %1457 = vmatpush1.bf16.msra.mxu0 %v4368_v40  ;;  %v946_v40 = vlaneseq }
 0x1ec   : > { %1458 = vmatprep.subr.bf16.mxu0 %v4373_v43  ;;  %1500 = vmatpush1.bf16.msra.mxu1 %v4416_v61  ;;  %v944_v43 = vld [vmem:[%s5680_s15] sm:$0xf] }
 0x1ed   : > { %1501 = vmatprep.subr.bf16.mxu1 %v4421_v62  ;;  %v947_v41 = vshrl.u32 %v946_v40, 7 }
 0x1ef   : > { %1459 = vmatpush1.bf16.msra.mxu0 %v4371_v46  ;;  %v5812_v42 = vsub.s32 0, %v947_v41  ;;  %v952_v44 = vsub.s32 1, %v947_v41  ;;  %v956_v56 = vsub.s32 2, %v947_v41  ;;  %v960_v57 = vsub.s32 3, %v947_v41 }
 0x1f0   : > { %1460 = vmatprep.subr.bf16.mxu0 %v4376_v47  ;;  %1502 = vmatpush1.bf16.msra.mxu1 %v4419_v63 }
 0x1f1   : > { %1503 = vmatprep.subr.bf16.mxu1 %v4424_v0  ;;  %v953_v45 = vrot.slane %v944_v43, %v952_v44  ;;  %v961_v59 = vrot.slane %v944_v43, %v960_v57 }
 0x1f3   : > { %1461 = vmatpush1.bf16.msra.mxu0 %v4374_v50 }
 0x1f4   : > { %1462 = vmatprep.subr.bf16.mxu0 %v4379_v51  ;;  %1504 = vmatpush1.bf16.msra.mxu1 %v4422_v1 }
 0x1f5   : > { %1505 = vmatprep.subr.bf16.mxu1 %v4427_v2 }
 0x1f7   : > { %1463 = vmatpush1.bf16.msra.mxu0 %v4377_v54 }
 0x1f8   : > { %1464 = vmatprep.subr.bf16.mxu0 %v4382_v55  ;;  %1506 = vmatpush1.bf16.msra.mxu1 %v4425_v3  ;;  %v1268_v3 = vld [vmem:[%s5680_s15 + $0x4] sm:$0xf] }
 0x1f9   : > { %1507 = vmatprep.subr.bf16.mxu1 %v4430_v5 }
 0x1fb   : > { %1465 = vmatpush1.bf16.msra.mxu0 %v4380_v58  ;;  %v957_v58 = vrot.slane %v944_v43, %v956_v56 }
 0x1fc   : > { %1508 = vmatpush1.bf16.msra.mxu1 %v4428_v6  ;;  %1774 = vmatprep.subr.bf16.mxu0 %v4433_v7 }
 0x1fd   : > { %1817 = vmatprep.subr.bf16.mxu1 %v4436_v9  ;;  %v1277_v9 = vrot.slane %v1268_v3, %v952_v44 }
 0x1fe   : > { %1483 = vmatmul.mubr.bf16.vlgmr.msra.gmra.mrb[4].mxu0 %v5721_v28 }
 0x1ff   : > { %1806 = vmatprep.mubr.bf16.mxu0 %v5103_v4  ;;  %1526 = vmatmul.mubr.bf16.vlgmr.msra.gmra.mrb[4].mxu1 %v5721_v28 }
 0x200   : > { %1849 = vmatprep.mubr.bf16.mxu1 %v5103_v4  ;;  %1775 = vmatpush1.bf16.msra.mxu0 %v4431_v8  ;;  %v4442_v4 = vld [vmem:[%s5671_s19 + $0x8c] ss:$48 sps:$4 sm:$0xff]   ;;  %v1273_v8 = vrot.slane %v1268_v3, %v5812_v42  ;;  %s3436_s19 = sshll.u32 %s5106_s13, 4  ;;  %s3437_s19 = int_to_ptr.vmem [resolvable:$true] %s3436_s19 }
 0x201   : > { %1818 = vmatpush1.bf16.msra.mxu1 %v4434_v10  ;;  %1776 = vmatprep.subr.bf16.mxu0 %v4439_v11  ;;  %s4991_s18 = scalar_lea.vmem %s3437_s19, 256  ;;  %p4998_p9 = scmp.lt.s32.totalorder %s3437_s19, %s3437_s19 }
 0x202   : > { %1819 = vmatprep.subr.bf16.mxu1 %v4442_v4  ;;  %p4992_p1 = scmp.ne.s32.totalorder %s3437_s19, %s4991_s18  ;;  %p4999_p0 = scmp.lt.s32.totalorder %s4991_s18, %s4991_s18 }
 0x204   : > { %1777 = vmatpush1.bf16.msra.mxu0 %v4437_v12  ;;  %p4993_p2 = pnand %p4992_p1, %p4269_p4  ;;  %p5000_p13 = por %p4999_p0, %p4998_p9 }
 0x205   : > { %1820 = vmatpush1.bf16.msra.mxu1 %v4440_v13  ;;  %1778 = vmatprep.subr.bf16.mxu0 %v4445_v14 }
 0x206   : > { %1821 = vmatprep.subr.bf16.mxu1 %v4448_v17  ;;  %p4994_p8 = pneg %p4993_p2 }
 0x208   : > { %1779 = vmatpush1.bf16.msra.mxu0 %v4443_v15  ;;  %p5001_p6 = pnand %p5000_p13, %p4994_p8 }
 0x209   : > { %1822 = vmatpush1.bf16.msra.mxu1 %v4446_v16  ;;  %1780 = vmatprep.subr.bf16.mxu0 %v4451_v19  ;;  %v1281_v19 = vrot.slane %v1268_v3, %v956_v56 }
 0x20a   : > { %1823 = vmatprep.subr.bf16.mxu1 %v4454_v20  ;;  %v1285_v20 = vrot.slane %v1268_v3, %v960_v57 }
 0x20c   : > { %1781 = vmatpush1.bf16.msra.mxu0 %v4449_v18 }
 0x20d   : > { %1782 = vmatprep.subr.bf16.mxu0 %v4457_v21  ;;  %1824 = vmatpush1.bf16.msra.mxu1 %v4452_v22 }
 0x20e   : > { %1825 = vmatprep.subr.bf16.mxu1 %v4460_v23 }
 0x210   : > { %1783 = vmatpush1.bf16.msra.mxu0 %v4455_v24 }
 0x211   : > { %1784 = vmatprep.subr.bf16.mxu0 %v4463_v25  ;;  %1826 = vmatpush1.bf16.msra.mxu1 %v4458_v26 }
 0x212   : > { %1827 = vmatprep.subr.bf16.mxu1 %v4466_v27 }
 0x214   : > { %1785 = vmatpush1.bf16.msra.mxu0 %v4461_v29 }
 0x215   : > { %1786 = vmatprep.subr.bf16.mxu0 %v4469_v30  ;;  %1828 = vmatpush1.bf16.msra.mxu1 %v4464_v31 }
 0x216   : > { %1829 = vmatprep.subr.bf16.mxu1 %v4472_v32  ;;  %v1592_v32 = vld [vmem:[%s5680_s15 + $0x8] sm:$0xf] }
 0x218   : > { %1787 = vmatpush1.bf16.msra.mxu0 %v4467_v33  ;;  %v1597_v33 = vrot.slane %v1592_v32, %v5812_v42 }
 0x219   : > { %1788 = vmatprep.subr.bf16.mxu0 %v4475_v34  ;;  %1830 = vmatpush1.bf16.msra.mxu1 %v4470_v35  ;;  %v1601_v34 = vrot.slane %v1592_v32, %v952_v44  ;;  %v1605_v35 = vrot.slane %v1592_v32, %v956_v56 }
 0x21a   : > { %1831 = vmatprep.subr.bf16.mxu1 %v4478_v36 }
 0x21c   : > { %1789 = vmatpush1.bf16.msra.mxu0 %v4473_v37  ;;  %v1609_v37 = vrot.slane %v1592_v32, %v960_v57 }
 0x21d   : > { %1832 = vmatpush1.bf16.msra.mxu1 %v4476_v38  ;;  %4042 = vmatprep.subr.bf16.mxu0 %v5104_v39 }
 0x21e   : > { %4048 = vmatprep.subr.bf16.mxu1 %v5104_v39 }
 0x21f   : > { %1807 = vmatmul.mubr.bf16.vlgmr.msra.gmra.mrb[8].mxu0 %v5721_v28 }
 0x220   : > { %1850 = vmatmul.mubr.bf16.vlgmr.msra.gmra.mrb[8].mxu1 %v5721_v28  ;;  %4044 = vmatprep.mubr.msk.bf16.mxu0 %vm5105_vm0, %v5104_v39  ;;  %v949_v28 = vrot.slane %v944_v43, %v5812_v42 }
 0x221   : > { %4050 = vmatprep.mubr.msk.bf16.mxu1 %vm5105_vm0, %v5104_v39 }
 0x2b1   : > { %v1160_v46 = vpop.f32.mrb[0].mxu0  ;;  %v1203_v60 = vpop.f32.mrb[0].mxu1 }
 0x2b2   : > { %v1161_v47 = vadd.f32 %v1160_v46, %v949_v28  ;;  %v1162_v48 = vpop.f32.mrb[1].mxu0  ;;  %v1204_v61 = vadd.f32 %v1203_v60, %v957_v58  ;;  %v1205_v62 = vpop.f32.mrb[1].mxu1 }
 0x2b3   : > { %v1163_v49 = vadd.f32 %v1162_v48, %v953_v45  ;;  %v1164_v50 = vpop.f32.mrb[2].mxu0  ;;  %v1206_v63 = vadd.f32 %v1205_v62, %v961_v59  ;;  %v1207_v0 = vpop.f32.mrb[2].mxu1 }
 0x2b4   : > { %v1165_v51 = vadd.f32 %v1164_v50, %v949_v28  ;;  %v1166_v52 = vpop.f32.mrb[3].mxu0  ;;  %v1208_v1 = vadd.f32 %v1207_v0, %v957_v58  ;;  %v1209_v2 = vpop.f32.mrb[3].mxu1 }
 0x2b5   : > { %v5816_v53 = vpack.c.bf16 %v1163_v49, %v1161_v47  ;;  %v1167_v54 = vadd.f32 %v1166_v52, %v953_v45  ;;  %v5821_v5 = vpack.c.bf16 %v1206_v63, %v1204_v61  ;;  %v1210_v6 = vadd.f32 %v1209_v2, %v961_v59 }
 0x2b7   : > { %v5818_v55 = vpack.c.bf16 %v1167_v54, %v1165_v51  ;;  %v5823_v7 = vpack.c.bf16 %v1210_v6, %v1208_v1 }
 0x2d1   : > { %v1484_v10 = vpop.f32.mrb[4].mxu0 }
 0x2d2   : > { %v1485_v11 = vadd.f32 %v1484_v10, %v1273_v8  ;;  %v1486_v12 = vpop.f32.mrb[5].mxu0  ;;  %v1527_v21 = vpop.f32.mrb[4].mxu1 }
 0x2d3   : > { %v1487_v4 = vadd.f32 %v1486_v12, %v1277_v9  ;;  %v1488_v13 = vpop.f32.mrb[6].mxu0  ;;  %v1528_v22 = vadd.f32 %v1527_v21, %v1281_v19  ;;  %v1529_v23 = vpop.f32.mrb[5].mxu1 }
 0x2d4   : > { %v1489_v14 = vadd.f32 %v1488_v13, %v1273_v8  ;;  %v1490_v15 = vpop.f32.mrb[7].mxu0  ;;  %v1530_v24 = vadd.f32 %v1529_v23, %v1285_v20  ;;  %v1531_v25 = vpop.f32.mrb[6].mxu1 }
 0x2d5   : > { %v5826_v16 = vpack.c.bf16 %v1487_v4, %v1485_v11  ;;  %v1491_v17 = vadd.f32 %v1490_v15, %v1277_v9  ;;  %v1532_v26 = vadd.f32 %v1531_v25, %v1281_v19  ;;  %v1533_v27 = vpop.f32.mrb[7].mxu1  ;;  %v5866_v11 = vld [vmem:[#allocation6] ss:$0 sm:$0xff]  ;;  %v5868_v15 = vld [vmem:[#allocation6 + $0x1] ss:$0 sm:$0xff] }
 0x2d6   : > { %v5840_v29 = vpack.c.bf16 %v1530_v24, %v1528_v22  ;;  %v1534_v30 = vadd.f32 %v1533_v27, %v1285_v20 }
 0x2d7   : > { %v5828_v18 = vpack.c.bf16 %v1491_v17, %v1489_v14  ;;  %4043 = vmatpush3.bf16.xpose.msra.mxu0 %v5826_v16 }
 0x2d8   : > { %4054 = vmatprep.subr.bf16.mxu0 %v5104_v39  ;;  %v5842_v31 = vpack.c.bf16 %v1534_v30, %v1532_v26 }
 0x2d9   : > { %4049 = vmatpush3.bf16.xpose.msra.mxu1 %v5828_v18 }
 0x2da   : > { %4060 = vmatprep.subr.bf16.mxu1 %v5104_v39 }
 0x2de   : > { %4045 = vmatmul.mubr.bf16.vlgmr.msra.gmra.mrb[12].mxu0 %v5816_v53 }
 0x2df   : > { %4056 = vmatprep.mubr.msk.bf16.mxu0 %vm5105_vm0, %v5104_v39 }
 0x2e0   : > { %4051 = vmatmul.mubr.bf16.vlgmr.msra.gmra.mrb[12].mxu1 %v5818_v55 }
 0x2e1   : > { %4062 = vmatprep.mubr.msk.bf16.mxu1 %vm5105_vm0, %v5104_v39 }
 0x2f2   : > { %v1808_v36 = vpop.f32.mrb[8].mxu0 }
 0x2f3   : > { %v1809_v38 = vadd.f32 %v1808_v36, %v1597_v33  ;;  %v1810_v40 = vpop.f32.mrb[9].mxu0  ;;  %v1851_v28 = vpop.f32.mrb[8].mxu1 }
 0x2f4   : > { %v1811_v41 = vadd.f32 %v1810_v40, %v1601_v34  ;;  %v1812_v43 = vpop.f32.mrb[10].mxu0  ;;  %v1852_v47 = vadd.f32 %v1851_v28, %v1605_v35  ;;  %v1853_v48 = vpop.f32.mrb[9].mxu1 }
 0x2f5   : > { %v1813_v45 = vadd.f32 %v1812_v43, %v1597_v33  ;;  %v1814_v46 = vpop.f32.mrb[11].mxu0  ;;  %v1854_v51 = vadd.f32 %v1853_v48, %v1609_v37  ;;  %v1855_v52 = vpop.f32.mrb[10].mxu1  ;;  %v2102_v48 = vrot.slane %v5826_v16, 4  ;;  %v2100_v16 = vrot.slane %v5816_v53, 4 }
 0x2f6   : > { %v3944_v49 = vpack.c.bf16 %v1811_v41, %v1809_v38  ;;  %v1815_v50 = vadd.f32 %v1814_v46, %v1601_v34  ;;  %v1856_v54 = vadd.f32 %v1855_v52, %v1605_v35  ;;  %v1857_v42 = vpop.f32.mrb[11].mxu1  ;;  %v2144_v52 = vrot.slane %v5818_v55, 4 }
 0x2f7   : > { %v3945_v56 = vpack.c.bf16 %v1854_v51, %v1852_v47  ;;  %v1858_v58 = vadd.f32 %v1857_v42, %v1609_v37  ;;  %v2146_v51 = vrot.slane %v5828_v18, 4 }
 0x2f8   : > { %v3946_v44 = vpack.c.bf16 %v1815_v50, %v1813_v45  ;;  %v2008_v57 = vsel %vm2006_vm1, %v3944_v49, 0  ;;  %v2216_v61 = vrot.slane %v3944_v49, 4 }
 0x2f9   : > { %v3947_v59 = vpack.c.bf16 %v1858_v58, %v1856_v54  ;;  %4055 = vmatpush3.bf16.msra.mxu0 %v2008_v57  ;;  %v2634_v63 = vrot.slane %v3945_v56, 4  ;;  %v5855_v3 = vsel %vm2006_vm1, %v3945_v56, 0 }
 0x2fa   : > { %v2054_v60 = vsel %vm2006_vm1, %v3946_v44, 0  ;;  %v2263_v62 = vrot.slane %v3946_v44, 4  ;;  %4066 = vmatprep.subr.bf16.mxu0 %v5104_v39  ;;  %v2221_v1 = vsel %vm2006_vm1, %v2216_v61, 0 }
 0x2fb   : > { %4061 = vmatpush3.bf16.msra.mxu1 %v2054_v60  ;;  %v2681_v0 = vrot.slane %v3947_v59, 4  ;;  %v5858_v6 = vsel %vm2006_vm1, %v3947_v59, 0  ;;  %v5861_v8 = vsel %vm2006_vm1, %v2634_v63, 0 }
 0x2fc   : > { %4072 = vmatprep.subr.bf16.mxu1 %v5104_v39  ;;  %v5852_v2 = vsel %vm2006_vm1, %v2263_v62, 0 }
 0x2fd   : > { %v5864_v9 = vsel %vm2006_vm1, %v2681_v0, 0 }
 0x3b1   : > { %v1928_v10 = vpop.f32.mrb[12].mxu0 }
 0x3b2   : > { %v1974_v12 = vmul.f32 0.35355338, %v1928_v10  ;;  %v4046_v4 = vpop.f32.mrb[13].mxu0 }
 0x3b3   : > { %v1931_v13 = vpop.f32.mrb[14].mxu0  ;;  %v1968_v14 = vpop.f32.mrb[12].mxu1 }
 0x3b4   : > { %v1975_v17 = vmul.f32 0.35355338, %v1968_v14  ;;  %v4047_v19 = vpop.f32.mrb[15].mxu0  ;;  %v4052_v20 = vpop.f32.mrb[13].mxu1  ;;  %v1976_v21 = vadd.f32 %v5866_v11, %v1974_v12 }
 0x3b5   : > { %v1971_v22 = vpop.f32.mrb[14].mxu1 }
 0x3b6   : > { %v4053_v23 = vpop.f32.mrb[15].mxu1  ;;  %v1979_v24 = vsel %vm1978_vm2, %v1976_v21, -inf  ;;  %v1977_v25 = vadd.f32 %v5868_v15, %v1975_v17 }
 0x3b7   : > { %1980 = vmax.xlane.f32.xlu0 %v1979_v24 }
 0x3b8   : > { %v1982_v26 = vsel %vm1978_vm2, %v1977_v25, -inf }
 0x3bb   : > { %1983 = vmax.xlane.f32.xlu0 %v1982_v26 }
 0x444   : > { %v1981_v27 = vpop.xlane.xlu0 %1980 }
 0x445   : > { %v1985_v30 = vsub.f32 %v1976_v21, %v1981_v27 }
 0x447   : > { %v1987_v32 = vmul.f32 1.442695, %v1985_v30 }
 0x448   : > { %v1984_v33 = vpop.xlane.xlu0 %1983 }
 0x449   : > { %4533 = vpow2.f32 %v1987_v32  ;;  %v1986_v34 = vsub.f32 %v1977_v25, %v1984_v33 }
 0x44b   : > { %v1989_v35 = vmul.f32 1.442695, %v1986_v34 }
 0x44d   : > { %4535 = vpow2.f32 %v1989_v35 }
 0x453   : > { %v4534_v36 = vpop.eup %4533 }
 0x454   : > { %v1991_v37 = vsel %vm1978_vm2, %v4534_v36, 0.0 }
 0x455   : > { %1992 = vadd.xlane.f32.xlu1 %v1991_v37 }
 0x457   : > { %v4536_v38 = vpop.eup %4535 }
 0x458   : > { %v1994_v40 = vsel %vm1978_vm2, %v4536_v38, 0.0 }
 0x459   : > { %1995 = vadd.xlane.f32.xlu1 %v1994_v40 }
 0x4e2   : > { %v1993_v41 = vpop.xlane.xlu1 %1992 }
 0x4e3   : > { %4537 = vrcp.f32 %v1993_v41 }
 0x4e6   : > { %v1996_v43 = vpop.xlane.xlu1 %1995 }
 0x4e7   : > { %4539 = vrcp.f32 %v1996_v43 }
 0x4ed   : > { %v4538_v28 = vpop.eup %4537 }
 0x4ee   : > { %v1999_v45 = vmul.f32 %v4538_v28, %v4534_v36 }
 0x4f0   : > { %v2001_v46 = vpack.c.bf16 %v1999_v45, %v1999_v45 }
 0x4f1   : > { %v4540_v47 = vpop.eup %4539 }
 0x4f2   : > { %v2000_v49 = vmul.f32 %v4540_v47, %v4536_v38  ;;  %4057 = vmatmul.mubr.msk.bf16.vlgmr.msra.gmra.mrb[16].mxu0 %vm1978_vm2, %v2001_v46 }
 0x4f3   : > { %4067 = vmatpush3.bf16.xpose.msra.mxu0 %v2102_v48  ;;  %4068 = vmatprep.mubr.msk.bf16.mxu0 %vm5105_vm0, %v5104_v39 }
 0x4f4   : > { %v2002_v50 = vpack.c.bf16 %v2000_v49, %v2000_v49  ;;  %4078 = vmatprep.subr.bf16.mxu0 %v5104_v39 }
 0x4f6   : > { %4063 = vmatmul.mubr.msk.bf16.vlgmr.msra.gmra.mrb[16].mxu1 %vm1978_vm2, %v2002_v50 }
 0x4f7   : > { %4073 = vmatpush3.bf16.xpose.msra.mxu1 %v2146_v51  ;;  %4074 = vmatprep.mubr.msk.bf16.mxu1 %vm5105_vm0, %v5104_v39 }
 0x4f8   : > { %4084 = vmatprep.subr.bf16.mxu1 %v5104_v39 }
 0x4fa   : > { %4069 = vmatmul.mubr.bf16.vlgmr.msra.gmra.mrb[20].mxu0 %v2100_v16 }
 0x4fb   : > { %4079 = vmatpush3.bf16.msra.mxu0 %v2221_v1  ;;  %4080 = vmatprep.mubr.msk.bf16.mxu0 %vm5105_vm0, %v5104_v39 }
 0x4fc   : > { %4090 = vmatprep.subr.bf16.mxu0 %v5104_v39 }
 0x4fe   : > { %4075 = vmatmul.mubr.bf16.vlgmr.msra.gmra.mrb[20].mxu1 %v2144_v52 }
 0x4ff   : > { %4085 = vmatpush3.bf16.msra.mxu1 %v5852_v2  ;;  %4086 = vmatprep.mubr.msk.bf16.mxu1 %vm5105_vm0, %v5104_v39 }
 0x500   : > { %4096 = vmatprep.subr.bf16.mxu1 %v5104_v39 }
 0x5c5   : > { %v2044_v53 = vpop.f32.mrb[16].mxu0 }
 0x5c6   : > { %v2096_v18 = vpack.c.bf16 %v2044_v53, %v2044_v53  ;;  %v4058_v54 = vpop.f32.mrb[17].mxu0 }
 0x5c7   : > { %v2047_v42 = vpop.f32.mrb[18].mxu0 }
 0x5c8   : > { %2098 = vst [vmem:[#allocation2] sm:$0xf] %v2096_v18  ;;  %v4059_v44 = vpop.f32.mrb[19].mxu0 }
 0x5c9   : > { %v2090_v56 = vpop.f32.mrb[16].mxu1 }
 0x5ca   : > { %v2097_v58 = vpack.c.bf16 %v2090_v56, %v2090_v56  ;;  %v4064_v57 = vpop.f32.mrb[17].mxu1 }
 0x5cb   : > { %v2093_v55 = vpop.f32.mrb[18].mxu1 }
 0x5cc   : > { %2099 = vst [vmem:[#allocation2 + $0x10] sm:$0xf] %v2097_v58  ;;  %v4065_v59 = vpop.f32.mrb[19].mxu1 }
 0x5cd   : > { %v2138_v60 = vpop.f32.mrb[20].mxu0 }
 0x5ce   : > { %v2188_v61 = vmul.f32 0.35355338, %v2138_v60  ;;  %v4070_v62 = vpop.f32.mrb[21].mxu0 }
 0x5cf   : > { %v2141_v63 = vpop.f32.mrb[22].mxu0 }
 0x5d0   : > { %v4071_v0 = vpop.f32.mrb[23].mxu0  ;;  %v2190_v1 = vadd.f32 %v5866_v11, %v2188_v61 }
 0x5d1   : > { %v2182_v2 = vpop.f32.mrb[20].mxu1 }
 0x5d2   : > { %v2189_v10 = vmul.f32 0.35355338, %v2182_v2  ;;  %v4076_v12 = vpop.f32.mrb[21].mxu1  ;;  %v2192_v4 = vsel %vm1978_vm2, %v2190_v1, -inf }
 0x5d3   : > { %v2185_v13 = vpop.f32.mrb[22].mxu1  ;;  %2193 = vmax.xlane.f32.xlu0 %v2192_v4 }
 0x5d4   : > { %v4077_v14 = vpop.f32.mrb[23].mxu1  ;;  %v2191_v17 = vadd.f32 %v5868_v15, %v2189_v10 }
 0x5d6   : > { %v2195_v19 = vsel %vm1978_vm2, %v2191_v17, -inf }
 0x5d7   : > { %2196 = vmax.xlane.f32.xlu1 %v2195_v19 }
 0x660   : > { %v2194_v20 = vpop.xlane.xlu0 %2193 }
 0x661   : > { %v2198_v21 = vsub.f32 %v2190_v1, %v2194_v20 }
 0x663   : > { %v2200_v22 = vmul.f32 1.442695, %v2198_v21 }
 0x664   : > { %v2197_v23 = vpop.xlane.xlu1 %2196 }
 0x665   : > { %4541 = vpow2.f32 %v2200_v22  ;;  %v2199_v24 = vsub.f32 %v2191_v17, %v2197_v23  ;;  %v2520_v23 = vrot.slane %v5840_v29, 4 }
 0x667   : > { %v2202_v25 = vmul.f32 1.442695, %v2199_v24 }
 0x669   : > { %4543 = vpow2.f32 %v2202_v25 }
 0x66f   : > { %v4542_v26 = vpop.eup %4541 }
 0x670   : > { %v2204_v27 = vsel %vm1978_vm2, %v4542_v26, 0.0 }
 0x671   : > { %2205 = vadd.xlane.f32.xlu0 %v2204_v27  ;;  %v2562_v27 = vrot.slane %v5823_v7, 4 }
 0x673   : > { %v4544_v30 = vpop.eup %4543 }
 0x674   : > { %v2207_v32 = vsel %vm1978_vm2, %v4544_v30, 0.0 }
 0x675   : > { %2208 = vadd.xlane.f32.xlu1 %v2207_v32 }
 0x6fe   : > { %v2206_v33 = vpop.xlane.xlu0 %2205 }
 0x6ff   : > { %4545 = vrcp.f32 %v2206_v33 }
 0x702   : > { %v2209_v34 = vpop.xlane.xlu1 %2208 }
 0x703   : > { %4547 = vrcp.f32 %v2209_v34 }
 0x709   : > { %v4546_v35 = vpop.eup %4545 }
 0x70a   : > { %v2212_v36 = vmul.f32 %v4546_v35, %v4542_v26  ;;  %v2564_v26 = vrot.slane %v5842_v31, 4 }
 0x70c   : > { %v2214_v37 = vpack.c.bf16 %v2212_v36, %v2212_v36 }
 0x70d   : > { %v4548_v38 = vpop.eup %4547 }
 0x70e   : > { %v2213_v40 = vmul.f32 %v4548_v38, %v4544_v30  ;;  %4081 = vmatmul.mubr.msk.bf16.vlgmr.msra.gmra.mrb[24].mxu0 %vm1978_vm2, %v2214_v37 }
 0x70f   : > { %4091 = vmatpush3.bf16.xpose.msra.mxu0 %v5840_v29  ;;  %4092 = vmatprep.mubr.msk.bf16.mxu0 %vm5105_vm0, %v5104_v39  ;;  %v2518_v29 = vrot.slane %v5821_v5, 4 }
 0x710   : > { %v2215_v41 = vpack.c.bf16 %v2213_v40, %v2213_v40  ;;  %4102 = vmatprep.subr.bf16.mxu0 %v5104_v39 }
 0x712   : > { %4087 = vmatmul.mubr.msk.bf16.vlgmr.msra.gmra.mrb[24].mxu1 %vm1978_vm2, %v2215_v41 }
 0x713   : > { %4097 = vmatpush3.bf16.xpose.msra.mxu1 %v5842_v31  ;;  %4098 = vmatprep.mubr.msk.bf16.mxu1 %vm5105_vm0, %v5104_v39 }
 0x714   : > { %4108 = vmatprep.subr.bf16.mxu1 %v5104_v39 }
 0x716   : > { %4093 = vmatmul.mubr.bf16.vlgmr.msra.gmra.mrb[28].mxu0 %v5821_v5 }
 0x717   : > { %4103 = vmatpush3.bf16.msra.mxu0 %v5855_v3  ;;  %4104 = vmatprep.mubr.msk.bf16.mxu0 %vm5105_vm0, %v5104_v39 }
 0x718   : > { %4114 = vmatprep.subr.bf16.mxu0 %v5104_v39 }
 0x71a   : > { %4099 = vmatmul.mubr.bf16.vlgmr.msra.gmra.mrb[28].mxu1 %v5823_v7 }
 0x71b   : > { %4109 = vmatpush3.bf16.msra.mxu1 %v5858_v6  ;;  %4110 = vmatprep.mubr.msk.bf16.mxu1 %vm5105_vm0, %v5104_v39 }
 0x71c   : > { %4120 = vmatprep.subr.bf16.mxu1 %v5104_v39 }
 0x7e1   : > { %v2257_v43 = vpop.f32.mrb[24].mxu0 }
 0x7e2   : > { %v2310_v28 = vpack.c.bf16 %v2257_v43, %v2257_v43  ;;  %v4082_v45 = vpop.f32.mrb[25].mxu0 }
 0x7e3   : > { %v2260_v46 = vpop.f32.mrb[26].mxu0 }
 0x7e4   : > { %2312 = vst [vmem:[#allocation2 + $0x4] sm:$0xf] %v2310_v28  ;;  %v4083_v3 = vpop.f32.mrb[27].mxu0 }
 0x7e5   : > { %v2304_v47 = vpop.f32.mrb[24].mxu1 }
 0x7e6   : > { %v2311_v48 = vpack.c.bf16 %v2304_v47, %v2304_v47  ;;  %v4088_v49 = vpop.f32.mrb[25].mxu1 }
 0x7e7   : > { %v2307_v50 = vpop.f32.mrb[26].mxu1 }
 0x7e8   : > { %2313 = vst [vmem:[#allocation2 + $0x14] sm:$0xf] %v2311_v48  ;;  %v4089_v51 = vpop.f32.mrb[27].mxu1 }
 0x7e9   : > { %v2348_v16 = vpop.f32.mrb[28].mxu0 }
 0x7ea   : > { %v2394_v52 = vmul.f32 0.35355338, %v2348_v16  ;;  %v4094_v6 = vpop.f32.mrb[29].mxu0 }
 0x7eb   : > { %v2351_v53 = vpop.f32.mrb[30].mxu0 }
 0x7ec   : > { %v4095_v18 = vpop.f32.mrb[31].mxu0  ;;  %v2396_v54 = vadd.f32 %v5866_v11, %v2394_v52 }
 0x7ed   : > { %v2388_v42 = vpop.f32.mrb[28].mxu1 }
 0x7ee   : > { %v2395_v44 = vmul.f32 0.35355338, %v2388_v42  ;;  %v4100_v56 = vpop.f32.mrb[29].mxu1  ;;  %v2398_v58 = vsel %vm1978_vm2, %v2396_v54, -inf }
 0x7ef   : > { %v2391_v57 = vpop.f32.mrb[30].mxu1  ;;  %2399 = vmax.xlane.f32.xlu0 %v2398_v58  ;;  %v4498_v56 = vld [vmem:[%s5682_s27 + $0xc0] sm:$0xff]  }
 0x7f0   : > { %v4101_v55 = vpop.f32.mrb[31].mxu1  ;;  %v2397_v59 = vadd.f32 %v5868_v15, %v2395_v44  ;;  %v4479_v44 = vld [vmem:[%s5682_s27 + $0x40] sm:$0xff]  }
 0x7f2   : > { %v2401_v60 = vsel %vm1978_vm2, %v2397_v59, -inf }
 0x7f3   : > { %2402 = vmax.xlane.f32.xlu1 %v2401_v60  ;;  %v4480_v60 = vld [vmem:[%s5682_s27] sm:$0xff]  }
 0x87c   : > { %v2400_v61 = vpop.xlane.xlu0 %2399 }
 0x87d   : > { %v2404_v62 = vsub.f32 %v2396_v54, %v2400_v61 }
 0x87f   : > { %v2406_v63 = vmul.f32 1.442695, %v2404_v62  ;;  %v4484_v62 = vld [vmem:[%s5682_s27 + $0x48] sm:$0xff]  }
 0x880   : > { %v2403_v0 = vpop.xlane.xlu1 %2402 }
 0x881   : > { %4549 = vpow2.f32 %v2406_v63  ;;  %v2405_v1 = vsub.f32 %v2397_v59, %v2403_v0  ;;  %v4483_v0 = vld [vmem:[#allocation2 + $0x4] ss:$16 sps:$4 sm:$0xff]  }
 0x883   : > { %v2408_v2 = vmul.f32 1.442695, %v2405_v1 }
 0x885   : > { %4551 = vpow2.f32 %v2408_v2  ;;  %v4485_v2 = vld [vmem:[%s5682_s27 + $0x8] sm:$0xff]  }
 0x88b   : > { %v4550_v10 = vpop.eup %4549 }
 0x88c   : > { %v2410_v12 = vsel %vm1978_vm2, %v4550_v10, 0.0 }
 0x88d   : > { %2411 = vadd.xlane.f32.xlu0 %v2410_v12 }
 0x88f   : > { %v4552_v4 = vpop.eup %4551 }
 0x890   : > { %v2413_v13 = vsel %vm1978_vm2, %v4552_v4, 0.0 }
 0x891   : > { %2414 = vadd.xlane.f32.xlu1 %v2413_v13  ;;  %v4500_v13 = vld [vmem:[%s5682_s27 + $0xc8] sm:$0xff]  }
 0x91a   : > { %v2412_v14 = vpop.xlane.xlu0 %2411 }
 0x91b   : > { %4553 = vrcp.f32 %v2412_v14  ;;  %v4487_v14 = vld [vmem:[%s5682_s27 + $0x10] sm:$0xff]  }
 0x91e   : > { %v2415_v17 = vpop.xlane.xlu1 %2414 }
 0x91f   : > { %4555 = vrcp.f32 %v2415_v17  ;;  %v4501_v17 = vld [vmem:[%s5682_s27 + $0x88] sm:$0xff]  }
 0x925   : > { %v4554_v19 = vpop.eup %4553 }
 0x926   : > { %v2418_v20 = vmul.f32 %v4554_v19, %v4550_v10  ;;  %v4499_v10 = vld [vmem:[%s5682_s27 + $0x80] sm:$0xff]   ;;  %v4488_v19 = vld [vmem:[%s5682_s27 + $0x58] sm:$0xff]  }
 0x928   : > { %v2420_v21 = vpack.c.bf16 %v2418_v20, %v2418_v20  ;;  %v4502_v20 = vld [vmem:[%s5682_s27 + $0xd0] sm:$0xff]  }
 0x929   : > { %v4556_v22 = vpop.eup %4555 }
 0x92a   : > { %v2419_v24 = vmul.f32 %v4556_v22, %v4552_v4  ;;  %4105 = vmatmul.mubr.msk.bf16.vlgmr.msra.gmra.mrb[32].mxu0 %vm1978_vm2, %v2420_v21  ;;  %v4486_v4 = vld [vmem:[%s5682_s27 + $0x50] sm:$0xff]   ;;  %v4489_v21 = vld [vmem:[%s5682_s27 + $0x18] sm:$0xff]  }
 0x92b   : > { %4115 = vmatpush3.bf16.xpose.msra.mxu0 %v2520_v23  ;;  %4116 = vmatprep.mubr.msk.bf16.mxu0 %vm5105_vm0, %v5104_v39  ;;  %v4503_v22 = vld [vmem:[%s5682_s27 + $0x90] sm:$0xff]   ;;  %v4490_v23 = vld [vmem:[%s5682_s27 + $0x60] sm:$0xff]  }
 0x92c   : > { %v2421_v25 = vpack.c.bf16 %v2419_v24, %v2419_v24  ;;  %4126 = vmatprep.subr.bf16.mxu0 %v5104_v39  ;;  %v4504_v24 = vld [vmem:[%s5682_s27 + $0xd8] sm:$0xff]  }
 0x92e   : > { %4111 = vmatmul.mubr.msk.bf16.vlgmr.msra.gmra.mrb[32].mxu1 %vm1978_vm2, %v2421_v25  ;;  %v4491_v25 = vld [vmem:[%s5682_s27 + $0x20] sm:$0xff]  }
 0x92f   : > { %4121 = vmatpush3.bf16.xpose.msra.mxu1 %v2564_v26  ;;  %4122 = vmatprep.mubr.msk.bf16.mxu1 %vm5105_vm0, %v5104_v39  ;;  %v4505_v26 = vld [vmem:[%s5682_s27 + $0x98] sm:$0xff]  }
 0x930   : > { %4132 = vmatprep.subr.bf16.mxu1 %v5104_v39 }
 0x932   : > { %4117 = vmatmul.mubr.bf16.vlgmr.msra.gmra.mrb[36].mxu0 %v2518_v29  ;;  %v4492_v29 = vld [vmem:[%s5682_s27 + $0x68] sm:$0xff]  }
 0x933   : > { %4127 = vmatpush3.bf16.msra.mxu0 %v5861_v8  ;;  %4128 = vmatprep.mubr.msk.bf16.mxu0 %vm5105_vm0, %v5104_v39 }
 0x934   : > { %3980 = vmatprep.subr.bf16.mxu0 %v4479_v44 }
 0x936   : > { %4123 = vmatmul.mubr.bf16.vlgmr.msra.gmra.mrb[36].mxu1 %v2562_v27  ;;  %v4493_v27 = vld [vmem:[%s5682_s27 + $0x28] sm:$0xff]  }
 0x937   : > { %4133 = vmatpush3.bf16.msra.mxu1 %v5864_v9  ;;  %4134 = vmatprep.mubr.msk.bf16.mxu1 %vm5105_vm0, %v5104_v39 }
 0x938   : > { %4002 = vmatprep.subr.bf16.mxu1 %v4498_v56 }
 0x9fd   : > { %v2462_v31 = vpop.f32.mrb[32].mxu0 }
 0x9fe   : > { %v2514_v30 = vpack.c.bf16 %v2462_v31, %v2462_v31  ;;  %v4106_v32 = vpop.f32.mrb[33].mxu0  ;;  %v4494_v31 = vld [vmem:[%s5682_s27 + $0x70] sm:$0xff]  }
 0x9ff   : > { %v2465_v5 = vpop.f32.mrb[34].mxu0  ;;  %v4496_v32 = vld [vmem:[%s5682_s27 + $0x78] sm:$0xff]  }
 0xa00   : > { %2516 = vst [vmem:[#allocation2 + $0x8] sm:$0xf] %v2514_v30  ;;  %v4107_v33 = vpop.f32.mrb[35].mxu0  ;;  %v4495_v30 = vld [vmem:[%s5682_s27 + $0x30] sm:$0xff]   ;;  %v4497_v5 = vld [vmem:[%s5682_s27 + $0x38] sm:$0xff]  }
 0xa01   : > { %v2508_v34 = vpop.f32.mrb[32].mxu1  ;;  %v4481_v33 = vld [vmem:[#allocation2] ss:$16 sps:$4 sm:$0xff]  }
 0xa02   : > { %v2515_v35 = vpack.c.bf16 %v2508_v34, %v2508_v34  ;;  %v4112_v8 = vpop.f32.mrb[33].mxu1  ;;  %v4506_v34 = vld [vmem:[%s5682_s27 + $0xe0] sm:$0xff]  }
 0xa03   : > { %v2511_v36 = vpop.f32.mrb[34].mxu1  ;;  %v4508_v8 = vld [vmem:[%s5682_s27 + $0xe8] sm:$0xff]  }
 0xa04   : > { %2517 = vst [vmem:[#allocation2 + $0x18] sm:$0xf] %v2515_v35  ;;  %v4113_v37 = vpop.f32.mrb[35].mxu1  ;;  %v4507_v35 = vld [vmem:[%s5682_s27 + $0xa0] sm:$0xff]   ;;  %v4509_v36 = vld [vmem:[%s5682_s27 + $0xa8] sm:$0xff]  }
 0xa05   : > { %v2556_v38 = vpop.f32.mrb[36].mxu0  ;;  %v4510_v37 = vld [vmem:[%s5682_s27 + $0xf0] sm:$0xff]  }
 0xa06   : > { %v2606_v7 = vmul.f32 0.35355338, %v2556_v38  ;;  %v4118_v40 = vpop.f32.mrb[37].mxu0  ;;  %v4511_v38 = vld [vmem:[%s5682_s27 + $0xb0] sm:$0xff]  }
 0xa07   : > { %v2559_v41 = vpop.f32.mrb[38].mxu0  ;;  %v4513_v40 = vld [vmem:[%s5682_s27 + $0xb8] sm:$0xff]  }
 0xa08   : > { %v4119_v9 = vpop.f32.mrb[39].mxu0  ;;  %v2608_v43 = vadd.f32 %v5866_v11, %v2606_v7  ;;  %v4512_v7 = vld [vmem:[%s5682_s27 + $0xf8] sm:$0xff]  }
 0xa09   : > { %v2600_v28 = vpop.f32.mrb[36].mxu1 }
 0xa0a   : > { %v2607_v45 = vmul.f32 0.35355338, %v2600_v28  ;;  %v4124_v46 = vpop.f32.mrb[37].mxu1  ;;  %v2610_v3 = vsel %vm1978_vm2, %v2608_v43, -inf }
 0xa0b   : > { %v2603_v47 = vpop.f32.mrb[38].mxu1  ;;  %2611 = vmax.xlane.f32.xlu0 %v2610_v3 }
 0xa0c   : > { %v4125_v48 = vpop.f32.mrb[39].mxu1  ;;  %v2609_v49 = vadd.f32 %v5868_v15, %v2607_v45 }
 0xa0e   : > { %v2613_v50 = vsel %vm1978_vm2, %v2609_v49, -inf }
 0xa0f   : > { %2614 = vmax.xlane.f32.xlu1 %v2613_v50  ;;  %v4514_v50 = vld [vmem:[#allocation2 + $0x8] ss:$16 sps:$4 sm:$0xff]  }
 0xa98   : > { %v2612_v51 = vpop.xlane.xlu0 %2611 }
 0xa99   : > { %v2616_v16 = vsub.f32 %v2608_v43, %v2612_v51 }
 0xa9b   : > { %v2618_v52 = vmul.f32 1.442695, %v2616_v16 }
 0xa9c   : > { %v2615_v6 = vpop.xlane.xlu1 %2614 }
 0xa9d   : > { %4557 = vpow2.f32 %v2618_v52  ;;  %v2617_v11 = vsub.f32 %v2609_v49, %v2615_v6 }
 0xa9f   : > { %v2620_v53 = vmul.f32 1.442695, %v2617_v11 }
 0xaa1   : > { %4559 = vpow2.f32 %v2620_v53 }
 0xaa7   : > { %v4558_v18 = vpop.eup %4557 }
 0xaa8   : > { %v2622_v54 = vsel %vm1978_vm2, %v4558_v18, 0.0 }
 0xaa9   : > { %2623 = vadd.xlane.f32.xlu0 %v2622_v54  ;;  %v3870_v54 = vld [vmem:[%s743_s2] ss:$0 sm:$0xff] }
 0xaab   : > { %v4560_v15 = vpop.eup %4559 }
 0xaac   : > { %v2625_v42 = vsel %vm1978_vm2, %v4560_v15, 0.0 }
 0xaad   : > { %2626 = vadd.xlane.f32.xlu1 %v2625_v42 }
 0xb36   : > { %v2624_v58 = vpop.xlane.xlu0 %2623 }
 0xb37   : > { %4561 = vrcp.f32 %v2624_v58 }
 0xb3a   : > { %v2627_v57 = vpop.xlane.xlu1 %2626 }
 0xb3b   : > { %4563 = vrcp.f32 %v2627_v57 }
 0xb41   : > { %v4562_v55 = vpop.eup %4561 }
 0xb42   : > { %v2630_v59 = vmul.f32 %v4562_v55, %v4558_v18 }
 0xb44   : > { %v2632_v61 = vpack.c.bf16 %v2630_v59, %v2630_v59 }
 0xb45   : > { %v4564_v63 = vpop.eup %4563 }
 0xb46   : > { %v2631_v1 = vmul.f32 %v4564_v63, %v4560_v15  ;;  %4129 = vmatmul.mubr.msk.bf16.vlgmr.msra.gmra.mrb[40].mxu0 %vm1978_vm2, %v2632_v61 }
 0xb47   : > { %3981 = vmatpush3.bf16.msra.mxu0 %v4480_v60  ;;  %3051 = vmatprep.mubr.bf16.mxu0 %v4483_v0  ;;  %v4574_v0 = vld [vmem:[#allocation20 + $0x8] sm:$0xff] }
 0xb48   : > { %3982 = vmatprep.subr.bf16.mxu0 %v4484_v62  ;;  %v2633_v12 = vpack.c.bf16 %v2631_v1, %v2631_v1  ;;  %v4573_v62 = vld [vmem:[#allocation20] sm:$0xff] }
 0xb4a   : > { %4135 = vmatmul.mubr.msk.bf16.vlgmr.msra.gmra.mrb[40].mxu1 %vm1978_vm2, %v2633_v12  ;;  %v4517_v12 = vld [vmem:[%s5687_s22] sm:$0xff]  }
 0xb4b   : > { %3983 = vmatpush3.bf16.msra.mxu0 %v4485_v2  ;;  %4003 = vmatpush3.bf16.msra.mxu1 %v4499_v10 }
 0xb4c   : > { %3984 = vmatprep.subr.bf16.mxu0 %v4486_v4  ;;  %4004 = vmatprep.subr.bf16.mxu1 %v4500_v13  ;;  %v4518_v4 = vld [vmem:[%s5687_s22 + $0x8] sm:$0xff]   ;;  %v4519_v13 = vld [vmem:[%s5687_s22 + $0x10] sm:$0xff]  }
 0xb4f   : > { %3985 = vmatpush3.bf16.msra.mxu0 %v4487_v14  ;;  %4005 = vmatpush3.bf16.msra.mxu1 %v4501_v17  ;;  %v4520_v14 = vld [vmem:[%s5687_s22 + $0x18] sm:$0xff]   ;;  %v4521_v17 = vld [vmem:[%s5687_s22 + $0x20] sm:$0xff]  }
 0xb50   : > { %3986 = vmatprep.subr.bf16.mxu0 %v4488_v19  ;;  %4006 = vmatprep.subr.bf16.mxu1 %v4502_v20  ;;  %v4522_v19 = vld [vmem:[%s5687_s22 + $0x28] sm:$0xff]   ;;  %v4523_v20 = vld [vmem:[%s5687_s22 + $0x30] sm:$0xff]  }
 0xb53   : > { %3987 = vmatpush3.bf16.msra.mxu0 %v4489_v21  ;;  %4007 = vmatpush3.bf16.msra.mxu1 %v4503_v22  ;;  %v4524_v21 = vld [vmem:[%s5687_s22 + $0x38] sm:$0xff]   ;;  %v4525_v22 = vld [vmem:[%s5690_s24] sm:$0xff]  }
 0xb54   : > { %3988 = vmatprep.subr.bf16.mxu0 %v4490_v23  ;;  %4008 = vmatprep.subr.bf16.mxu1 %v4504_v24  ;;  %v4526_v23 = vld [vmem:[%s5690_s24 + $0x8] sm:$0xff]   ;;  %v4527_v24 = vld [vmem:[%s5690_s24 + $0x10] sm:$0xff]  }
 0xb57   : > { %3989 = vmatpush3.bf16.msra.mxu0 %v4491_v25  ;;  %4009 = vmatpush3.bf16.msra.mxu1 %v4505_v26  ;;  %v4528_v25 = vld [vmem:[%s5690_s24 + $0x18] sm:$0xff]   ;;  %v4529_v26 = vld [vmem:[%s5690_s24 + $0x20] sm:$0xff]  }
 0xb58   : > { %3990 = vmatprep.subr.bf16.mxu0 %v4492_v29  ;;  %4010 = vmatprep.subr.bf16.mxu1 %v4506_v34  ;;  %v4530_v29 = vld [vmem:[%s5690_s24 + $0x28] sm:$0xff]  }
 0xb5b   : > { %3991 = vmatpush3.bf16.msra.mxu0 %v4493_v27  ;;  %4011 = vmatpush3.bf16.msra.mxu1 %v4507_v35 }
 0xb5c   : > { %3992 = vmatprep.subr.bf16.mxu0 %v4494_v31  ;;  %4012 = vmatprep.subr.bf16.mxu1 %v4508_v8 }
 0xb5f   : > { %3993 = vmatpush3.bf16.msra.mxu0 %v4495_v30  ;;  %4013 = vmatpush3.bf16.msra.mxu1 %v4509_v36 }
 0xb60   : > { %3994 = vmatprep.subr.bf16.mxu0 %v4496_v32  ;;  %4014 = vmatprep.subr.bf16.mxu1 %v4510_v37 }
 0xb63   : > { %3995 = vmatpush3.bf16.msra.mxu0 %v4497_v5  ;;  %4015 = vmatpush3.bf16.msra.mxu1 %v4511_v38 }
 0xb64   : > { %4138 = vmatprep.subr.bf16.mxu0 %v5104_v39  ;;  %4016 = vmatprep.subr.bf16.mxu1 %v4512_v7 }
 0xb66   : > { %3052 = vmatmul.mubr.bf16.vlgmr.msra.gmra.mrb[44].mxu0 %v4481_v33 }
 0xb67   : > { %4154 = vmatprep.mubr.msk.bf16.mxu0 %vm5105_vm0, %v5104_v39  ;;  %4017 = vmatpush3.bf16.msra.mxu1 %v4513_v40 }
 0xb68   : > { %4158 = vmatprep.subr.bf16.mxu1 %v5104_v39  ;;  %4139 = vmatpush3.bf16.msra.mxu0 %v4517_v12 }
 0xb69   : > { %4140 = vmatprep.subr.bf16.mxu0 %v5104_v39 }
 0xb6c   : > { %4141 = vmatpush3.bf16.msra.mxu0 %v4518_v4 }
 0xb6d   : > { %4142 = vmatprep.subr.bf16.mxu0 %v5104_v39 }
 0xb70   : > { %4143 = vmatpush3.bf16.msra.mxu0 %v4519_v13 }
 0xb71   : > { %4144 = vmatprep.subr.bf16.mxu0 %v5104_v39 }
 0xb74   : > { %4145 = vmatpush3.bf16.msra.mxu0 %v4520_v14 }
 0xb75   : > { %4146 = vmatprep.subr.bf16.mxu0 %v5104_v39 }
 0xb78   : > { %4147 = vmatpush3.bf16.msra.mxu0 %v4521_v17 }
 0xb79   : > { %4148 = vmatprep.subr.bf16.mxu0 %v5104_v39 }
 0xb7c   : > { %4149 = vmatpush3.bf16.msra.mxu0 %v4522_v19 }
 0xb7d   : > { %4150 = vmatprep.subr.bf16.mxu0 %v5104_v39 }
 0xb80   : > { %4151 = vmatpush3.bf16.msra.mxu0 %v4523_v20 }
 0xb81   : > { %4152 = vmatprep.subr.bf16.mxu0 %v5104_v39 }
 0xb84   : > { %4153 = vmatpush3.bf16.msra.mxu0 %v4524_v21 }
 0xc19   : > { %v2675_v41 = vpop.f32.mrb[40].mxu0 }
 0xc1a   : > { %v2728_v9 = vpack.c.bf16 %v2675_v41, %v2675_v41  ;;  %v4130_v43 = vpop.f32.mrb[41].mxu0 }
 0xc1b   : > { %v2678_v28 = vpop.f32.mrb[42].mxu0 }
 0xc1c   : > { %2730 = vst [vmem:[#allocation2 + $0xc] sm:$0xf] %v2728_v9  ;;  %v4131_v45 = vpop.f32.mrb[43].mxu0 }
 0xc1d   : > { %v2722_v46 = vpop.f32.mrb[40].mxu1  ;;  %v3907_v45 = vld [vmem:[%s751_s25] ss:$0 sm:$0xff] }
 0xc1e   : > { %v2729_v3 = vpack.c.bf16 %v2722_v46, %v2722_v46  ;;  %v4136_v47 = vpop.f32.mrb[41].mxu1 }
 0xc1f   : > { %v2725_v48 = vpop.f32.mrb[42].mxu1 }
 0xc20   : > { %2731 = vst [vmem:[#allocation2 + $0x1c] sm:$0xf] %v2729_v3  ;;  %v4137_v49 = vpop.f32.mrb[43].mxu1 }
 0xc27   : > { %v4516_v51 = vld [vmem:[#allocation2 + $0xc] ss:$16 sps:$4 sm:$0xff]  }
 0xc28   : > { %3092 = vmatprep.mubr.bf16.mxu1 %v4516_v51 }
 0xc29   : > { %3093 = vmatmul.mubr.bf16.vlgmr.msra.gmra.mrb[44].mxu1 %v4514_v50  ;;  %v3908_v50 = vld [vmem:[%s759_s29] ss:$0 sm:$0xff] }
 0xc2a   : > { %4174 = vmatprep.mubr.msk.bf16.mxu1 %vm5105_vm0, %v5104_v39  ;;  %4159 = vmatpush3.bf16.msra.mxu1 %v4525_v22 }
 0xc2b   : > { %4160 = vmatprep.subr.bf16.mxu1 %v5104_v39 }
 0xc2e   : > { %4161 = vmatpush3.bf16.msra.mxu1 %v4526_v23 }
 0xc2f   : > { %4162 = vmatprep.subr.bf16.mxu1 %v5104_v39 }
 0xc32   : > { %4163 = vmatpush3.bf16.msra.mxu1 %v4527_v24 }
 0xc33   : > { %4164 = vmatprep.subr.bf16.mxu1 %v5104_v39 }
 0xc36   : > { %4165 = vmatpush3.bf16.msra.mxu1 %v4528_v25 }
 0xc37   : > { %4166 = vmatprep.subr.bf16.mxu1 %v5104_v39 }
 0xc39   : > { %v3996_v16 = vpop.f32.mrb[44].mxu0 }
 0xc3a   : > { %v3997_v52 = vpop.f32.mrb[45].mxu0  ;;  %4167 = vmatpush3.bf16.msra.mxu1 %v4529_v26 }
 0xc3b   : > { %v3998_v6 = vadd.f32 %v3997_v52, %v3996_v16  ;;  %v3999_v11 = vpop.f32.mrb[46].mxu0  ;;  %4168 = vmatprep.subr.bf16.mxu1 %v5104_v39 }
 0xc3c   : > { %v4000_v53 = vpop.f32.mrb[47].mxu0 }
 0xc3d   : > { %v4001_v18 = vadd.f32 %v4000_v53, %v3999_v11  ;;  %v3054_v44 = vadd.f32 %v3998_v6, %v3870_v54  ;;  %v4531_v11 = vld [vmem:[%s5690_s24 + $0x30] sm:$0xff]   ;;  %v4532_v53 = vld [vmem:[%s5690_s24 + $0x38] sm:$0xff]  }
 0xc3e   : > { %4169 = vmatpush3.bf16.msra.mxu1 %v4530_v29 }
 0xc3f   : > { %v3057_v55 = vadd.f32 %v4001_v18, %v3870_v54  ;;  %4170 = vmatprep.subr.bf16.mxu1 %v5104_v39  ;;  %v3909_v18 = vld [vmem:[%s776_s16] ss:$0 sm:$0xff] }
 0xc42   : > { %4171 = vmatpush3.bf16.msra.mxu1 %v4531_v11 }
 0xc43   : > { %4172 = vmatprep.subr.bf16.mxu1 %v5104_v39 }
 0xc46   : > { %4173 = vmatpush3.bf16.msra.mxu1 %v4532_v53 }
 0xcfc   : > { %v4018_v15 = vpop.f32.mrb[44].mxu1 }
 0xcfd   : > { %v4019_v42 = vpop.f32.mrb[45].mxu1 }
 0xcfe   : > { %v4020_v56 = vadd.f32 %v4019_v42, %v4018_v15  ;;  %v4021_v58 = vpop.f32.mrb[46].mxu1 }
 0xcff   : > { %v4022_v57 = vpop.f32.mrb[47].mxu1 }
 0xd00   : > { %v3095_v59 = vadd.f32 %v4020_v56, %v3054_v44  ;;  %v4023_v60 = vadd.f32 %v4022_v57, %v4021_v58 }
 0xd02   : > { %v3098_v61 = vadd.f32 %v4023_v60, %v3057_v55  ;;  %v5993_v63 = vadd.f32 %v4573_v62, %v3095_v59  ;;  %v3918_v60 = vld [vmem:[%s793_s0] ss:$0 sm:$0xff] }
 0xd04   : > { %3103 = vadd.xlane.f32.xlu0 %v5993_v63  ;;  %v5996_v1 = vadd.f32 %v4574_v0, %v3098_v61  ;;  %v3109_v2 = vmul.f32 %v5993_v63, %v5993_v63 }
 0xd06   : > { %3105 = vadd.xlane.f32.xlu1 %v5996_v1  ;;  %v3110_v10 = vmul.f32 %v5996_v1, %v5996_v1 }
 0xd08   : > { %3111 = vadd.xlane.f32.xlu0 %v3109_v2 }
 0xd0a   : > { %3113 = vadd.xlane.f32.xlu1 %v3110_v10 }
 0xd91   : > { %v3104_v27 = vpop.xlane.xlu0 %3103 }
 0xd92   : > { %v3107_v31 = vmul.f32 0.03125, %v3104_v27 }
 0xd93   : > { %v3106_v30 = vpop.xlane.xlu1 %3105 }
 0xd94   : > { %v3108_v32 = vmul.f32 0.03125, %v3106_v30  ;;  %v3117_v33 = vmul.f32 %v3107_v31, %v3107_v31  ;;  %v3123_v43 = vsub.f32 %v5993_v63, %v3107_v31 }
 0xd95   : > { %v3112_v5 = vpop.xlane.xlu0 %3111 }
 0xd96   : > { %v3115_v34 = vmul.f32 0.03125, %v3112_v5  ;;  %v3118_v8 = vmul.f32 %v3108_v32, %v3108_v32  ;;  %v3124_v46 = vsub.f32 %v5996_v1, %v3108_v32 }
 0xd97   : > { %v3114_v35 = vpop.xlane.xlu1 %3113 }
 0xd98   : > { %v3119_v36 = vsub.f32 %v3115_v34, %v3117_v33  ;;  %v3116_v37 = vmul.f32 0.03125, %v3114_v35  ;;  %v3927_v34 = vld [vmem:[%s801_s21] ss:$0 sm:$0xff] }
 0xd9a   : > { %v3121_v38 = vmax.f32 %v3119_v36, 0.0  ;;  %v3120_v7 = vsub.f32 %v3116_v37, %v3118_v8  ;;  %v3928_v37 = vld [vmem:[%s809_s3] ss:$0 sm:$0xff] }
 0xd9c   : > { %v3125_v40 = vadd.f32 1e-05, %v3121_v38  ;;  %v3122_v41 = vmax.f32 %v3120_v7, 0.0 }
 0xd9e   : > { %4565 = vrsqrt.f32 %v3125_v40  ;;  %v3126_v9 = vadd.f32 1e-05, %v3122_v41 }
 0xda0   : > { %4567 = vrsqrt.f32 %v3126_v9 }
 0xda8   : > { %v4566_v28 = vpop.eup %4565 }
 0xda9   : > { %v3129_v3 = vmul.f32 %v4566_v28, %v3123_v43 }
 0xdaa   : > { %v4568_v47 = vpop.eup %4567 }
 0xdab   : > { %v3130_v48 = vmul.f32 %v4568_v47, %v3124_v46  ;;  %v3138_v49 = vmul.f32 %v3907_v45, %v3129_v3 }
 0xdad   : > { %v3139_v51 = vmul.f32 %v3907_v45, %v3130_v48  ;;  %v3147_v16 = vadd.f32 %v3908_v50, %v3138_v49 }
 0xdaf   : > { %v3148_v52 = vadd.f32 %v3908_v50, %v3139_v51 }
 0xdb1   : > { %v3149_v6 = vpack.c.bf16 %v3148_v52, %v3147_v16 }
 0xdb3   : > { %4155 = vmatmul.mubr.bf16.vlgmr.msra.gmra.mrb[48].mxu0 %v3149_v6 }
 0xe86   : > { %v3255_v54 = vpop.f32.mrb[48].mxu0 }
 0xe87   : > { %v3256_v15 = vadd.f32 %v3909_v18, %v3255_v54  ;;  %v4156_v42 = vpop.f32.mrb[49].mxu0 }
 0xe88   : > { %v3258_v44 = vpop.f32.mrb[50].mxu0 }
 0xe89   : > { %v3259_v56 = vadd.f32 %v3909_v18, %v3258_v44  ;;  %v4157_v58 = vpop.f32.mrb[51].mxu0  ;;  %v3262_v57 = vmax.f32 %v3256_v15, 0.0 }
 0xe8b   : > { %v3263_v55 = vmax.f32 %v3259_v56, 0.0 }
 0xe8d   : > { %v3264_v59 = vpack.c.bf16 %v3263_v55, %v3262_v57 }
 0xe8f   : > { %4175 = vmatmul.mubr.bf16.vlgmr.msra.gmra.mrb[48].mxu1 %v3264_v59 }
 0xf62   : > { %v3370_v61 = vpop.f32.mrb[48].mxu1 }
 0xf63   : > { %v3371_v62 = vadd.f32 %v3918_v60, %v3370_v61  ;;  %v4176_v63 = vpop.f32.mrb[49].mxu1 }
 0xf64   : > { %v3373_v39 = vpop.f32.mrb[50].mxu1 }
 0xf65   : > { %v3377_v0 = vadd.f32 %v3371_v62, %v3147_v16  ;;  %v3374_v1 = vadd.f32 %v3918_v60, %v3373_v39  ;;  %v4177_v2 = vpop.f32.mrb[51].mxu1 }
 0xf67   : > { %v3378_v10 = vadd.f32 %v3374_v1, %v3148_v52  ;;  %3379 = vadd.xlane.f32.xlu0 %v3377_v0  ;;  %v3385_v12 = vmul.f32 %v3377_v0, %v3377_v0 }
 0xf69   : > { %3381 = vadd.xlane.f32.xlu1 %v3378_v10  ;;  %v3386_v4 = vmul.f32 %v3378_v10, %v3378_v10 }
 0xf6b   : > { %3387 = vadd.xlane.f32.xlu0 %v3385_v12 }
 0xf6d   : > { %3389 = vadd.xlane.f32.xlu1 %v3386_v4 }
 0xff4   : > { %v3380_v13 = vpop.xlane.xlu0 %3379 }
 0xff5   : > { %v3383_v14 = vmul.f32 0.03125, %v3380_v13 }
 0xff6   : > { %v3382_v17 = vpop.xlane.xlu1 %3381 }
 0xff7   : > { %v3384_v19 = vmul.f32 0.03125, %v3382_v17  ;;  %v3393_v21 = vmul.f32 %v3383_v14, %v3383_v14  ;;  %v3399_v5 = vsub.f32 %v3377_v0, %v3383_v14 }
 0xff8   : > { %v3388_v20 = vpop.xlane.xlu0 %3387 }
 0xff9   : > { %v3391_v22 = vmul.f32 0.03125, %v3388_v20  ;;  %v3394_v24 = vmul.f32 %v3384_v19, %v3384_v19  ;;  %v3400_v35 = vsub.f32 %v3378_v10, %v3384_v19 }
 0xffa   : > { %v3390_v23 = vpop.xlane.xlu1 %3389 }
 0xffb   : > { %v3395_v25 = vsub.f32 %v3391_v22, %v3393_v21  ;;  %v3392_v26 = vmul.f32 0.03125, %v3390_v23 }
 0xffd   : > { %v3397_v29 = vmax.f32 %v3395_v25, 0.0  ;;  %v3396_v27 = vsub.f32 %v3392_v26, %v3394_v24 }
 0xfff   : > { %v3401_v31 = vadd.f32 1e-05, %v3397_v29  ;;  %v3398_v30 = vmax.f32 %v3396_v27, 0.0 }
0x1001   : > { %4569 = vrsqrt.f32 %v3401_v31  ;;  %v3402_v32 = vadd.f32 1e-05, %v3398_v30 }
0x1003   : > { %4571 = vrsqrt.f32 %v3402_v32 }
0x100b   : > { %v4570_v33 = vpop.eup %4569 }
0x100c   : > { %v3405_v8 = vmul.f32 %v4570_v33, %v3399_v5 }
0x100d   : > { %v4572_v36 = vpop.eup %4571 }
0x100e   : > { %v3406_v38 = vmul.f32 %v4572_v36, %v3400_v35  ;;  %v3414_v7 = vmul.f32 %v3927_v34, %v3405_v8 }
0x1010   : > { %v3415_v40 = vmul.f32 %v3927_v34, %v3406_v38  ;;  %v3423_v41 = vadd.f32 %v3928_v37, %v3414_v7 }
0x1012   : > { %v3424_v9 = vadd.f32 %v3928_v37, %v3415_v40  ;;  %3425 = vst [vmem:[#allocation20] sm:$0xff] %v3423_v41 }
0x1014   : > { %3426 = vst [vmem:[#allocation20 + $0x8] sm:$0xff] %v3424_v9 }
0x1015   : > { %5004 = shalt.err (!%p5001_p6)
}
0x1016   : > { %s6189_s14 = sld [smem:[#allocation40_spill]] }
0x101c   : > { %s5005_s15 = scalar_lea.hbm %s6189_s14, 256 }
0x101d   : > { %p5006_p11 = scmp.ne.s32.totalorder %s6189_s14, %s5005_s15  ;;  %p5011_p5 = scmp.lt.u32.totalorder %s5005_s15, %s6189_s14 }
0x101f   : > { %p5007_p12 = pnand %p5006_p11, %p4269_p4 }
0x1021   : > { %p5008_p7 = pneg %p5007_p12 }
0x1023   : > { %p5013_p10 = pnand %p5011_p5, %p5008_p7 }
0x1025   : > { %5016 = shalt.err (!%p5013_p10)
}
0x1026   : > { %s5107_s22 = smov 128   ;;  %s5108_s16 = smov 8  }
0x1027   : > { %4217 = dma.vmem_to_hbm [thread:$0]  (%p4269_p4), %s3437_s19, 256, %s6189_s14, [#allocation5], %s5107_s22, %s5107_s22, %s5108_s16  }
0x1028   : > { %5054 = dma.done.wait (%p4269_p4), [#allocation5], 256  }
0x1029   : > { %5056 = vsyncadd (%p4269_p4), [#allocation5], 4294967040 }
0x102a PF: > { %s6190_s21 = sld [smem:[#allocation28_spill]]  ;;  %s6191_s29 = sld [smem:[#allocation25_spill]] }
0x102b   : > { %s6192_s30 = sld [smem:[#allocation26_spill]]  ;;  %s6193_s15 = sld [smem:[#allocation32_spill]] }
0x102c   : > { %s6194_s3 = sld [smem:[#allocation30_spill]]  ;;  %s6195_s16 = smov %s5075_s17 }
0x1030   : > { %s27_s18 = sadd.s32 1, %s6190_s21  }
0x1031   : > { %p24_p3 = scmp.ge.s32.totalorder %s27_s18, 4  }
0x1032   : > { %s6196_s17 = smov %s6194_s3 }
0x1033   :  { %26 = sbr.rel (!%p24_p3) target bundleno = 12 (0xc), region = 248 }
0x103a   :  { %3452 = vsyncpa [#allocation4], 1 }
0x103b   :  { %3454 = vsyncpa [#allocation4 + $0x1], 1 }
0x103c   :  { %3455 = vsyncpa [#allocation7], 1 }
0x103d   :  { %3456 = vsyncpa [#allocation5], 1 }
0x103e   :  { %3458 = vsyncpa [#allocation5 + $0x1], 1 }

</bundles_post_ra>
